<compile_context>
chip_gen: v7x
topology: tpu7x:2x2x1
jax: 0.10.0
libtpu: 0.0.40
codegen_flags: <defaults>
</compile_context>

<pallas_src>
import jax
import jax.numpy as jnp
from jax.experimental import pallas as pl
from jax.experimental.pallas import tpu as pltpu


# ----------------------------- Pallas kernel --------------------------------
def _attention_block_kernel(wg_ref, wx_ref, wp_ref, bsum_ref, bp_ref,
                            gate_ref, skip_ref, out_ref):
    """One (batch, spatial-tile) block.

    gate_ref : (1, F_g, T)  VMEM      skip_ref : (1, F_l, T)  VMEM
    wg_ref   : (n_c, F_g)   SMEM      wx_ref   : (n_c, F_l)   SMEM
    wp_ref   : (n_c,)       SMEM      bsum_ref : (n_c,)       SMEM  (bg + bx)
    bp_ref   : (1,)         SMEM
    out_ref  : (1, F_l, T)  VMEM
    """
    g = gate_ref[0].astype(jnp.float32)   # (F_g, T)
    s = skip_ref[0].astype(jnp.float32)   # (F_l, T)

    F_g = g.shape[0]
    F_l = s.shape[0]
    n_c = wg_ref.shape[0]

    psi_logit = None
    for c in range(n_c):
        # act_c = relu( bg[c]+bx[c] + sum_k wg[c,k]*g[k] + sum_k wx[c,k]*s[k] )
        acc = bsum_ref[c] + wg_ref[c, 0] * g[0:1, :]          # (1, T)
        for k in range(1, F_g):
            acc = acc + wg_ref[c, k] * g[k:k + 1, :]
        for k in range(F_l):
            acc = acc + wx_ref[c, k] * s[k:k + 1, :]
        act = jnp.maximum(acc, 0.0)                           # ReLU
        term = wp_ref[c] * act                                # psi 1x1 conv (width 1)
        psi_logit = term if psi_logit is None else psi_logit + term

    psi = jax.nn.sigmoid(psi_logit + bp_ref[0])               # (1, T), EUP
    out_ref[0] = (s * psi).astype(out_ref.dtype)              # broadcast over channels


# ------------------------------- wrapper -------------------------------------
def _fold_bn(weight, bias, gamma, beta, running_mean, running_var, eps=1e-5):
    """Fold eval-mode BatchNorm into the preceding 1x1 conv.

    weight: (C_out, C_in), bias: (C_out,). Returns channel-major (C_out, C_in)
    weight and (C_out,) bias.
    """
    scale = gamma / jnp.sqrt(running_var + eps)               # (C_out,)
    w_eff = weight * scale[:, None]                            # (C_out, C_in)
    b_eff = (bias - running_mean) * scale + beta               # (C_out,)
    return w_eff.astype(jnp.float32), b_eff.astype(jnp.float32)


@jax.jit
def attention_block_forward(gate, skip, params):
    """gate: (N, F_g, H, W), skip: (N, F_l, H, W) in NCHW (PyTorch convention)."""
    N, F_g, H, W = gate.shape
    _, F_l, _, _ = skip.shape
    HW = H * W

    wg, bg = _fold_bn(params["wg"], params["bg"], params["bn_g_gamma"],
                      params["bn_g_beta"], params["bn_g_mean"], params["bn_g_var"])
    wx, bx = _fold_bn(params["wx"], params["bx"], params["bn_x_gamma"],
                      params["bn_x_beta"], params["bn_x_mean"], params["bn_x_var"])
    wp, bp = _fold_bn(params["wp"], params["bp"], params["bn_p_gamma"],
                      params["bn_p_beta"], params["bn_p_mean"], params["bn_p_var"])
    n_c = wg.shape[0]
    bsum = bg + bx                 # fuse the two branch biases host-side
    wp_vec = wp.reshape(n_c)       # (1, n_c) -> (n_c,)

    # NCHW -> (N, C, H*W): contiguous collapse, no HBM traffic.
    gate3 = gate.reshape(N, F_g, HW)
    skip3 = skip.reshape(N, F_l, HW)

    # Spatial tile: largest lane-dense block within a conservative VMEM budget
    # (double-buffered gate + skip + out blocks); portable to v7x's 64 MiB VMEM.
    itemsize = jnp.dtype(skip.dtype).itemsize
    block_budget = 8 * 1024 * 1024
    bytes_per_pixel = 2 * (F_g + 2 * F_l) * itemsize          # x2: double buffering
    max_tile = max(128, block_budget // max(1, bytes_per_pixel))
    if HW <= max_tile:
        tile_hw = HW                                          # full extent: always legal
    else:
        tile_hw = (max_tile // 128) * 128                     # lane-aligned; ragged last
                                                              # block masked by Pallas
    n_tiles = pl.cdiv(HW, tile_hw)

    smem_spec = pl.BlockSpec(memory_space=pltpu.MemorySpace.SMEM)
    out3 = pl.pallas_call(
        _attention_block_kernel,
        out_shape=jax.ShapeDtypeStruct((N, F_l, HW), skip.dtype),
        grid_spec=pl.GridSpec(
            grid=(N, n_tiles),
            in_specs=[
                smem_spec,                                            # wg   (n_c, F_g)
                smem_spec,                                            # wx   (n_c, F_l)
                smem_spec,                                            # wp   (n_c,)
                smem_spec,                                            # bsum (n_c,)
                smem_spec,                                            # bp   (1,)
                pl.BlockSpec((1, F_g, tile_hw), lambda n, t: (n, 0, t)),  # gate
                pl.BlockSpec((1, F_l, tile_hw), lambda n, t: (n, 0, t)),  # skip
            ],
            out_specs=pl.BlockSpec((1, F_l, tile_hw), lambda n, t: (n, 0, t)),
        ),
        compiler_params=pltpu.CompilerParams(
            dimension_semantics=("parallel", "parallel"),
            vmem_limit_bytes=32 * 1024 * 1024),
    )(wg, wx, wp_vec, bsum, bp, gate3, skip3)

    return out3.reshape(N, F_l, H, W)


# --------------------------- pure-JAX reference -------------------------------
def attention_block_reference(gate, skip, params):
    def conv1x1_bn(x, w, b, gamma, beta, mean, var, eps=1e-5):
        # x: (N, C_in, H, W), w: (C_out, C_in)
        y = jnp.einsum("nchw,oc->nohw", x.astype(jnp.float32), w) + b[None, :, None, None]
        scale = gamma / jnp.sqrt(var + eps)
        return (y - mean[None, :, None, None]) * scale[None, :, None, None] \
            + beta[None, :, None, None]

    g1 = conv1x1_bn(gate, params["wg"], params["bg"], params["bn_g_gamma"],
                    params["bn_g_beta"], params["bn_g_mean"], params["bn_g_var"])
    x1 = conv1x1_bn(skip, params["wx"], params["bx"], params["bn_x_gamma"],
                    params["bn_x_beta"], params["bn_x_mean"], params["bn_x_var"])
    act = jnp.maximum(g1 + x1, 0.0)
    psi = conv1x1_bn(act, params["wp"], params["bp"], params["bn_p_gamma"],
                     params["bn_p_beta"], params["bn_p_mean"], params["bn_p_var"])
    psi = jax.nn.sigmoid(psi)
    return skip.astype(jnp.float32) * psi


# ---------------------------------- main --------------------------------------
if __name__ == "__main__":
    # Small shapes consistent with the module: gate/skip are NCHW feature maps.
    N, F_g, F_l, n_coefficients, H, W = 2, 8, 8, 4, 16, 16

    key = jax.random.PRNGKey(0)
    keys = jax.random.split(key, 16)

    gate = jax.random.normal(keys[0], (N, F_g, H, W), dtype=jnp.float32)
    skip = jax.random.normal(keys[1], (N, F_l, H, W), dtype=jnp.float32)

    params = {
        # W_gate: Conv2d(F_g -> n_coefficients, 1x1) + BatchNorm2d
        "wg": jax.random.normal(keys[2], (n_coefficients, F_g)) * 0.2,
        "bg": jax.random.normal(keys[3], (n_coefficients,)) * 0.1,
        "bn_g_gamma": 1.0 + 0.1 * jax.random.normal(keys[4], (n_coefficients,)),
        "bn_g_beta": 0.1 * jax.random.normal(keys[5], (n_coefficients,)),
        "bn_g_mean": jnp.zeros((n_coefficients,)),
        "bn_g_var": jnp.ones((n_coefficients,)),
        # W_x: Conv2d(F_l -> n_coefficients, 1x1) + BatchNorm2d
        "wx": jax.random.normal(keys[6], (n_coefficients, F_l)) * 0.2,
        "bx": jax.random.normal(keys[7], (n_coefficients,)) * 0.1,
        "bn_x_gamma": 1.0 + 0.1 * jax.random.normal(keys[8], (n_coefficients,)),
        "bn_x_beta": 0.1 * jax.random.normal(keys[9], (n_coefficients,)),
        "bn_x_mean": jnp.zeros((n_coefficients,)),
        "bn_x_var": jnp.ones((n_coefficients,)),
        # psi: Conv2d(n_coefficients -> 1, 1x1) + BatchNorm2d(1) + Sigmoid
        "wp": jax.random.normal(keys[10], (1, n_coefficients)) * 0.2,
        "bp": jax.random.normal(keys[11], (1,)) * 0.1,
        "bn_p_gamma": 1.0 + 0.1 * jax.random.normal(keys[12], (1,)),
        "bn_p_beta": 0.1 * jax.random.normal(keys[13], (1,)),
        "bn_p_mean": jnp.zeros((1,)),
        "bn_p_var": jnp.ones((1,)),
    }
    params = {k: v.astype(jnp.float32) for k, v in params.items()}

    out = attention_block_forward(gate, skip, params)
    out = jax.block_until_ready(out)

    ref = attention_block_reference(gate, skip, params)
    assert out.shape == (N, F_l, H, W), out.shape
    assert jnp.allclose(out, ref, atol=1e-4, rtol=1e-4), \
        float(jnp.max(jnp.abs(out - ref)))

    print("KERNEL_OK")
</pallas_src>

<mosaic_0001>
module attributes {stable_mosaic.version = 11 : i64} {
  func.func @_attention_block_kernel(%arg0: i32, %arg1: i32, %arg2: memref<4x8xf32, #tpu.memory_space<smem>>, %arg3: memref<4x8xf32, #tpu.memory_space<smem>>, %arg4: memref<4xf32, #tpu.memory_space<smem>>, %arg5: memref<4xf32, #tpu.memory_space<smem>>, %arg6: memref<1xf32, #tpu.memory_space<smem>>, %arg7: memref<1x8x256xf32, #tpu.memory_space<vmem>>, %arg8: memref<1x8x256xf32, #tpu.memory_space<vmem>>, %arg9: memref<1x8x256xf32, #tpu.memory_space<vmem>>) attributes {dimension_semantics = [#tpu.dimension_semantics<parallel>, #tpu.dimension_semantics<parallel>], iteration_bounds = array<i64: 2, 1>, scalar_prefetch = 0 : i64, scratch_operands = 0 : i64, tpu.core_type = #tpu.core_type<tc>, window_params = [{transform_indices = @transform_0, window_bounds = array<i64: 4, 8>}, {transform_indices = @transform_1, window_bounds = array<i64: 4, 8>}, {transform_indices = @transform_2, window_bounds = array<i64: 4>}, {transform_indices = @transform_3, window_bounds = array<i64: 4>}, {transform_indices = @transform_4, window_bounds = array<i64: 1>}, {transform_indices = @transform_5, window_bounds = array<i64: 1, 8, 256>}, {transform_indices = @transform_6, window_bounds = array<i64: 1, 8, 256>}, {transform_indices = @transform_7, window_bounds = array<i64: 1, 8, 256>}]} {
    %c0 = arith.constant 0 : index
    %c0_0 = arith.constant 0 : index
    %c0_1 = arith.constant 0 : index
    %0 = vector.load %arg7[%c0, %c0_0, %c0_1] : memref<1x8x256xf32, #tpu.memory_space<vmem>>, vector<1x8x256xf32>
    %1 = vector.shape_cast %0 : vector<1x8x256xf32> to vector<8x256xf32>
    %c0_2 = arith.constant 0 : index
    %c0_3 = arith.constant 0 : index
    %c0_4 = arith.constant 0 : index
    %2 = vector.load %arg8[%c0_2, %c0_3, %c0_4] : memref<1x8x256xf32, #tpu.memory_space<vmem>>, vector<1x8x256xf32>
    %3 = vector.shape_cast %2 : vector<1x8x256xf32> to vector<8x256xf32>
    %c0_5 = arith.constant 0 : index
    %4 = memref.load %arg5[%c0_5] : memref<4xf32, #tpu.memory_space<smem>>
    %c0_6 = arith.constant 0 : index
    %c0_7 = arith.constant 0 : index
    %5 = memref.load %arg2[%c0_6, %c0_7] : memref<4x8xf32, #tpu.memory_space<smem>>
    %6 = vector.extract_strided_slice %1 {offsets = [0, 0], sizes = [1, 256], strides = [1, 1]} : vector<8x256xf32> to vector<1x256xf32>
    %7 = vector.broadcast %5 : f32 to vector<1x256xf32>
    %8 = arith.mulf %7, %6 : vector<1x256xf32>
    %9 = vector.broadcast %4 : f32 to vector<1x256xf32>
    %10 = arith.addf %9, %8 : vector<1x256xf32>
    %c0_8 = arith.constant 0 : index
    %c1 = arith.constant 1 : index
    %11 = memref.load %arg2[%c0_8, %c1] : memref<4x8xf32, #tpu.memory_space<smem>>
    %12 = vector.extract_strided_slice %1 {offsets = [1, 0], sizes = [1, 256], strides = [1, 1]} : vector<8x256xf32> to vector<1x256xf32>
    %13 = vector.broadcast %11 : f32 to vector<1x256xf32>
    %14 = arith.mulf %13, %12 : vector<1x256xf32>
    %15 = arith.addf %10, %14 : vector<1x256xf32>
    %c0_9 = arith.constant 0 : index
    %c2 = arith.constant 2 : index
    %16 = memref.load %arg2[%c0_9, %c2] : memref<4x8xf32, #tpu.memory_space<smem>>
    %17 = vector.extract_strided_slice %1 {offsets = [2, 0], sizes = [1, 256], strides = [1, 1]} : vector<8x256xf32> to vector<1x256xf32>
    %18 = vector.broadcast %16 : f32 to vector<1x256xf32>
    %19 = arith.mulf %18, %17 : vector<1x256xf32>
    %20 = arith.addf %15, %19 : vector<1x256xf32>
    %c0_10 = arith.constant 0 : index
    %c3 = arith.constant 3 : index
    %21 = memref.load %arg2[%c0_10, %c3] : memref<4x8xf32, #tpu.memory_space<smem>>
    %22 = vector.extract_strided_slice %1 {offsets = [3, 0], sizes = [1, 256], strides = [1, 1]} : vector<8x256xf32> to vector<1x256xf32>
    %23 = vector.broadcast %21 : f32 to vector<1x256xf32>
    %24 = arith.mulf %23, %22 : vector<1x256xf32>
    %25 = arith.addf %20, %24 : vector<1x256xf32>
    %c0_11 = arith.constant 0 : index
    %c4 = arith.constant 4 : index
    %26 = memref.load %arg2[%c0_11, %c4] : memref<4x8xf32, #tpu.memory_space<smem>>
    %27 = vector.extract_strided_slice %1 {offsets = [4, 0], sizes = [1, 256], strides = [1, 1]} : vector<8x256xf32> to vector<1x256xf32>
    %28 = vector.broadcast %26 : f32 to vector<1x256xf32>
    %29 = arith.mulf %28, %27 : vector<1x256xf32>
    %30 = arith.addf %25, %29 : vector<1x256xf32>
    %c0_12 = arith.constant 0 : index
    %c5 = arith.constant 5 : index
    %31 = memref.load %arg2[%c0_12, %c5] : memref<4x8xf32, #tpu.memory_space<smem>>
    %32 = vector.extract_strided_slice %1 {offsets = [5, 0], sizes = [1, 256], strides = [1, 1]} : vector<8x256xf32> to vector<1x256xf32>
    %33 = vector.broadcast %31 : f32 to vector<1x256xf32>
    %34 = arith.mulf %33, %32 : vector<1x256xf32>
    %35 = arith.addf %30, %34 : vector<1x256xf32>
    %c0_13 = arith.constant 0 : index
    %c6 = arith.constant 6 : index
    %36 = memref.load %arg2[%c0_13, %c6] : memref<4x8xf32, #tpu.memory_space<smem>>
    %37 = vector.extract_strided_slice %1 {offsets = [6, 0], sizes = [1, 256], strides = [1, 1]} : vector<8x256xf32> to vector<1x256xf32>
    %38 = vector.broadcast %36 : f32 to vector<1x256xf32>
    %39 = arith.mulf %38, %37 : vector<1x256xf32>
    %40 = arith.addf %35, %39 : vector<1x256xf32>
    %c0_14 = arith.constant 0 : index
    %c7 = arith.constant 7 : index
    %41 = memref.load %arg2[%c0_14, %c7] : memref<4x8xf32, #tpu.memory_space<smem>>
    %42 = vector.extract_strided_slice %1 {offsets = [7, 0], sizes = [1, 256], strides = [1, 1]} : vector<8x256xf32> to vector<1x256xf32>
    %43 = vector.broadcast %41 : f32 to vector<1x256xf32>
    %44 = arith.mulf %43, %42 : vector<1x256xf32>
    %45 = arith.addf %40, %44 : vector<1x256xf32>
    %c0_15 = arith.constant 0 : index
    %c0_16 = arith.constant 0 : index
    %46 = memref.load %arg3[%c0_15, %c0_16] : memref<4x8xf32, #tpu.memory_space<smem>>
    %47 = vector.extract_strided_slice %3 {offsets = [0, 0], sizes = [1, 256], strides = [1, 1]} : vector<8x256xf32> to vector<1x256xf32>
    %48 = vector.broadcast %46 : f32 to vector<1x256xf32>
    %49 = arith.mulf %48, %47 : vector<1x256xf32>
    %50 = arith.addf %45, %49 : vector<1x256xf32>
    %c0_17 = arith.constant 0 : index
    %c1_18 = arith.constant 1 : index
    %51 = memref.load %arg3[%c0_17, %c1_18] : memref<4x8xf32, #tpu.memory_space<smem>>
    %52 = vector.extract_strided_slice %3 {offsets = [1, 0], sizes = [1, 256], strides = [1, 1]} : vector<8x256xf32> to vector<1x256xf32>
    %53 = vector.broadcast %51 : f32 to vector<1x256xf32>
    %54 = arith.mulf %53, %52 : vector<1x256xf32>
    %55 = arith.addf %50, %54 : vector<1x256xf32>
    %c0_19 = arith.constant 0 : index
    %c2_20 = arith.constant 2 : index
    %56 = memref.load %arg3[%c0_19, %c2_20] : memref<4x8xf32, #tpu.memory_space<smem>>
    %57 = vector.extract_strided_slice %3 {offsets = [2, 0], sizes = [1, 256], strides = [1, 1]} : vector<8x256xf32> to vector<1x256xf32>
    %58 = vector.broadcast %56 : f32 to vector<1x256xf32>
    %59 = arith.mulf %58, %57 : vector<1x256xf32>
    %60 = arith.addf %55, %59 : vector<1x256xf32>
    %c0_21 = arith.constant 0 : index
    %c3_22 = arith.constant 3 : index
    %61 = memref.load %arg3[%c0_21, %c3_22] : memref<4x8xf32, #tpu.memory_space<smem>>
    %62 = vector.extract_strided_slice %3 {offsets = [3, 0], sizes = [1, 256], strides = [1, 1]} : vector<8x256xf32> to vector<1x256xf32>
    %63 = vector.broadcast %61 : f32 to vector<1x256xf32>
    %64 = arith.mulf %63, %62 : vector<1x256xf32>
    %65 = arith.addf %60, %64 : vector<1x256xf32>
    %c0_23 = arith.constant 0 : index
    %c4_24 = arith.constant 4 : index
    %66 = memref.load %arg3[%c0_23, %c4_24] : memref<4x8xf32, #tpu.memory_space<smem>>
    %67 = vector.extract_strided_slice %3 {offsets = [4, 0], sizes = [1, 256], strides = [1, 1]} : vector<8x256xf32> to vector<1x256xf32>
    %68 = vector.broadcast %66 : f32 to vector<1x256xf32>
    %69 = arith.mulf %68, %67 : vector<1x256xf32>
    %70 = arith.addf %65, %69 : vector<1x256xf32>
    %c0_25 = arith.constant 0 : index
    %c5_26 = arith.constant 5 : index
    %71 = memref.load %arg3[%c0_25, %c5_26] : memref<4x8xf32, #tpu.memory_space<smem>>
    %72 = vector.extract_strided_slice %3 {offsets = [5, 0], sizes = [1, 256], strides = [1, 1]} : vector<8x256xf32> to vector<1x256xf32>
    %73 = vector.broadcast %71 : f32 to vector<1x256xf32>
    %74 = arith.mulf %73, %72 : vector<1x256xf32>
    %75 = arith.addf %70, %74 : vector<1x256xf32>
    %c0_27 = arith.constant 0 : index
    %c6_28 = arith.constant 6 : index
    %76 = memref.load %arg3[%c0_27, %c6_28] : memref<4x8xf32, #tpu.memory_space<smem>>
    %77 = vector.extract_strided_slice %3 {offsets = [6, 0], sizes = [1, 256], strides = [1, 1]} : vector<8x256xf32> to vector<1x256xf32>
    %78 = vector.broadcast %76 : f32 to vector<1x256xf32>
    %79 = arith.mulf %78, %77 : vector<1x256xf32>
    %80 = arith.addf %75, %79 : vector<1x256xf32>
    %c0_29 = arith.constant 0 : index
    %c7_30 = arith.constant 7 : index
    %81 = memref.load %arg3[%c0_29, %c7_30] : memref<4x8xf32, #tpu.memory_space<smem>>
    %82 = vector.extract_strided_slice %3 {offsets = [7, 0], sizes = [1, 256], strides = [1, 1]} : vector<8x256xf32> to vector<1x256xf32>
    %83 = vector.broadcast %81 : f32 to vector<1x256xf32>
    %84 = arith.mulf %83, %82 : vector<1x256xf32>
    %85 = arith.addf %80, %84 : vector<1x256xf32>
    %cst = arith.constant 0.000000e+00 : f32
    %86 = vector.broadcast %cst : f32 to vector<1x256xf32>
    %87 = arith.maximumf %85, %86 : vector<1x256xf32>
    %c0_31 = arith.constant 0 : index
    %88 = memref.load %arg4[%c0_31] : memref<4xf32, #tpu.memory_space<smem>>
    %89 = vector.broadcast %88 : f32 to vector<1x256xf32>
    %90 = arith.mulf %89, %87 : vector<1x256xf32>
    %c1_32 = arith.constant 1 : index
    %91 = memref.load %arg5[%c1_32] : memref<4xf32, #tpu.memory_space<smem>>
    %c1_33 = arith.constant 1 : index
    %c0_34 = arith.constant 0 : index
    %92 = memref.load %arg2[%c1_33, %c0_34] : memref<4x8xf32, #tpu.memory_space<smem>>
    %93 = vector.extract_strided_slice %1 {offsets = [0, 0], sizes = [1, 256], strides = [1, 1]} : vector<8x256xf32> to vector<1x256xf32>
    %94 = vector.broadcast %92 : f32 to vector<1x256xf32>
    %95 = arith.mulf %94, %93 : vector<1x256xf32>
    %96 = vector.broadcast %91 : f32 to vector<1x256xf32>
    %97 = arith.addf %96, %95 : vector<1x256xf32>
    %c1_35 = arith.constant 1 : index
    %c1_36 = arith.constant 1 : index
    %98 = memref.load %arg2[%c1_35, %c1_36] : memref<4x8xf32, #tpu.memory_space<smem>>
    %99 = vector.extract_strided_slice %1 {offsets = [1, 0], sizes = [1, 256], strides = [1, 1]} : vector<8x256xf32> to vector<1x256xf32>
    %100 = vector.broadcast %98 : f32 to vector<1x256xf32>
    %101 = arith.mulf %100, %99 : vector<1x256xf32>
    %102 = arith.addf %97, %101 : vector<1x256xf32>
    %c1_37 = arith.constant 1 : index
    %c2_38 = arith.constant 2 : index
    %103 = memref.load %arg2[%c1_37, %c2_38] : memref<4x8xf32, #tpu.memory_space<smem>>
    %104 = vector.extract_strided_slice %1 {offsets = [2, 0], sizes = [1, 256], strides = [1, 1]} : vector<8x256xf32> to vector<1x256xf32>
    %105 = vector.broadcast %103 : f32 to vector<1x256xf32>
    %106 = arith.mulf %105, %104 : vector<1x256xf32>
    %107 = arith.addf %102, %106 : vector<1x256xf32>
    %c1_39 = arith.constant 1 : index
    %c3_40 = arith.constant 3 : index
    %108 = memref.load %arg2[%c1_39, %c3_40] : memref<4x8xf32, #tpu.memory_space<smem>>
    %109 = vector.extract_strided_slice %1 {offsets = [3, 0], sizes = [1, 256], strides = [1, 1]} : vector<8x256xf32> to vector<1x256xf32>
    %110 = vector.broadcast %108 : f32 to vector<1x256xf32>
    %111 = arith.mulf %110, %109 : vector<1x256xf32>
    %112 = arith.addf %107, %111 : vector<1x256xf32>
    %c1_41 = arith.constant 1 : index
    %c4_42 = arith.constant 4 : index
    %113 = memref.load %arg2[%c1_41, %c4_42] : memref<4x8xf32, #tpu.memory_space<smem>>
    %114 = vector.extract_strided_slice %1 {offsets = [4, 0], sizes = [1, 256], strides = [1, 1]} : vector<8x256xf32> to vector<1x256xf32>
    %115 = vector.broadcast %113 : f32 to vector<1x256xf32>
    %116 = arith.mulf %115, %114 : vector<1x256xf32>
    %117 = arith.addf %112, %116 : vector<1x256xf32>
    %c1_43 = arith.constant 1 : index
    %c5_44 = arith.constant 5 : index
    %118 = memref.load %arg2[%c1_43, %c5_44] : memref<4x8xf32, #tpu.memory_space<smem>>
    %119 = vector.extract_strided_slice %1 {offsets = [5, 0], sizes = [1, 256], strides = [1, 1]} : vector<8x256xf32> to vector<1x256xf32>
    %120 = vector.broadcast %118 : f32 to vector<1x256xf32>
    %121 = arith.mulf %120, %119 : vector<1x256xf32>
    %122 = arith.addf %117, %121 : vector<1x256xf32>
    %c1_45 = arith.constant 1 : index
    %c6_46 = arith.constant 6 : index
    %123 = memref.load %arg2[%c1_45, %c6_46] : memref<4x8xf32, #tpu.memory_space<smem>>
    %124 = vector.extract_strided_slice %1 {offsets = [6, 0], sizes = [1, 256], strides = [1, 1]} : vector<8x256xf32> to vector<1x256xf32>
    %125 = vector.broadcast %123 : f32 to vector<1x256xf32>
    %126 = arith.mulf %125, %124 : vector<1x256xf32>
    %127 = arith.addf %122, %126 : vector<1x256xf32>
    %c1_47 = arith.constant 1 : index
    %c7_48 = arith.constant 7 : index
    %128 = memref.load %arg2[%c1_47, %c7_48] : memref<4x8xf32, #tpu.memory_space<smem>>
    %129 = vector.extract_strided_slice %1 {offsets = [7, 0], sizes = [1, 256], strides = [1, 1]} : vector<8x256xf32> to vector<1x256xf32>
    %130 = vector.broadcast %128 : f32 to vector<1x256xf32>
    %131 = arith.mulf %130, %129 : vector<1x256xf32>
    %132 = arith.addf %127, %131 : vector<1x256xf32>
    %c1_49 = arith.constant 1 : index
    %c0_50 = arith.constant 0 : index
    %133 = memref.load %arg3[%c1_49, %c0_50] : memref<4x8xf32, #tpu.memory_space<smem>>
    %134 = vector.extract_strided_slice %3 {offsets = [0, 0], sizes = [1, 256], strides = [1, 1]} : vector<8x256xf32> to vector<1x256xf32>
    %135 = vector.broadcast %133 : f32 to vector<1x256xf32>
    %136 = arith.mulf %135, %134 : vector<1x256xf32>
    %137 = arith.addf %132, %136 : vector<1x256xf32>
    %c1_51 = arith.constant 1 : index
    %c1_52 = arith.constant 1 : index
    %138 = memref.load %arg3[%c1_51, %c1_52] : memref<4x8xf32, #tpu.memory_space<smem>>
    %139 = vector.extract_strided_slice %3 {offsets = [1, 0], sizes = [1, 256], strides = [1, 1]} : vector<8x256xf32> to vector<1x256xf32>
    %140 = vector.broadcast %138 : f32 to vector<1x256xf32>
    %141 = arith.mulf %140, %139 : vector<1x256xf32>
    %142 = arith.addf %137, %141 : vector<1x256xf32>
    %c1_53 = arith.constant 1 : index
    %c2_54 = arith.constant 2 : index
    %143 = memref.load %arg3[%c1_53, %c2_54] : memref<4x8xf32, #tpu.memory_space<smem>>
    %144 = vector.extract_strided_slice %3 {offsets = [2, 0], sizes = [1, 256], strides = [1, 1]} : vector<8x256xf32> to vector<1x256xf32>
    %145 = vector.broadcast %143 : f32 to vector<1x256xf32>
    %146 = arith.mulf %145, %144 : vector<1x256xf32>
    %147 = arith.addf %142, %146 : vector<1x256xf32>
    %c1_55 = arith.constant 1 : index
    %c3_56 = arith.constant 3 : index
    %148 = memref.load %arg3[%c1_55, %c3_56] : memref<4x8xf32, #tpu.memory_space<smem>>
    %149 = vector.extract_strided_slice %3 {offsets = [3, 0], sizes = [1, 256], strides = [1, 1]} : vector<8x256xf32> to vector<1x256xf32>
    %150 = vector.broadcast %148 : f32 to vector<1x256xf32>
    %151 = arith.mulf %150, %149 : vector<1x256xf32>
    %152 = arith.addf %147, %151 : vector<1x256xf32>
    %c1_57 = arith.constant 1 : index
    %c4_58 = arith.constant 4 : index
    %153 = memref.load %arg3[%c1_57, %c4_58] : memref<4x8xf32, #tpu.memory_space<smem>>
    %154 = vector.extract_strided_slice %3 {offsets = [4, 0], sizes = [1, 256], strides = [1, 1]} : vector<8x256xf32> to vector<1x256xf32>
    %155 = vector.broadcast %153 : f32 to vector<1x256xf32>
    %156 = arith.mulf %155, %154 : vector<1x256xf32>
    %157 = arith.addf %152, %156 : vector<1x256xf32>
    %c1_59 = arith.constant 1 : index
    %c5_60 = arith.constant 5 : index
    %158 = memref.load %arg3[%c1_59, %c5_60] : memref<4x8xf32, #tpu.memory_space<smem>>
    %159 = vector.extract_strided_slice %3 {offsets = [5, 0], sizes = [1, 256], strides = [1, 1]} : vector<8x256xf32> to vector<1x256xf32>
    %160 = vector.broadcast %158 : f32 to vector<1x256xf32>
    %161 = arith.mulf %160, %159 : vector<1x256xf32>
    %162 = arith.addf %157, %161 : vector<1x256xf32>
    %c1_61 = arith.constant 1 : index
    %c6_62 = arith.constant 6 : index
    %163 = memref.load %arg3[%c1_61, %c6_62] : memref<4x8xf32, #tpu.memory_space<smem>>
    %164 = vector.extract_strided_slice %3 {offsets = [6, 0], sizes = [1, 256], strides = [1, 1]} : vector<8x256xf32> to vector<1x256xf32>
    %165 = vector.broadcast %163 : f32 to vector<1x256xf32>
    %166 = arith.mulf %165, %164 : vector<1x256xf32>
    %167 = arith.addf %162, %166 : vector<1x256xf32>
    %c1_63 = arith.constant 1 : index
    %c7_64 = arith.constant 7 : index
    %168 = memref.load %arg3[%c1_63, %c7_64] : memref<4x8xf32, #tpu.memory_space<smem>>
    %169 = vector.extract_strided_slice %3 {offsets = [7, 0], sizes = [1, 256], strides = [1, 1]} : vector<8x256xf32> to vector<1x256xf32>
    %170 = vector.broadcast %168 : f32 to vector<1x256xf32>
    %171 = arith.mulf %170, %169 : vector<1x256xf32>
    %172 = arith.addf %167, %171 : vector<1x256xf32>
    %cst_65 = arith.constant 0.000000e+00 : f32
    %173 = vector.broadcast %cst_65 : f32 to vector<1x256xf32>
    %174 = arith.maximumf %172, %173 : vector<1x256xf32>
    %c1_66 = arith.constant 1 : index
    %175 = memref.load %arg4[%c1_66] : memref<4xf32, #tpu.memory_space<smem>>
    %176 = vector.broadcast %175 : f32 to vector<1x256xf32>
    %177 = arith.mulf %176, %174 : vector<1x256xf32>
    %178 = arith.addf %90, %177 : vector<1x256xf32>
    %c2_67 = arith.constant 2 : index
    %179 = memref.load %arg5[%c2_67] : memref<4xf32, #tpu.memory_space<smem>>
    %c2_68 = arith.constant 2 : index
    %c0_69 = arith.constant 0 : index
    %180 = memref.load %arg2[%c2_68, %c0_69] : memref<4x8xf32, #tpu.memory_space<smem>>
    %181 = vector.extract_strided_slice %1 {offsets = [0, 0], sizes = [1, 256], strides = [1, 1]} : vector<8x256xf32> to vector<1x256xf32>
    %182 = vector.broadcast %180 : f32 to vector<1x256xf32>
    %183 = arith.mulf %182, %181 : vector<1x256xf32>
    %184 = vector.broadcast %179 : f32 to vector<1x256xf32>
    %185 = arith.addf %184, %183 : vector<1x256xf32>
    %c2_70 = arith.constant 2 : index
    %c1_71 = arith.constant 1 : index
    %186 = memref.load %arg2[%c2_70, %c1_71] : memref<4x8xf32, #tpu.memory_space<smem>>
    %187 = vector.extract_strided_slice %1 {offsets = [1, 0], sizes = [1, 256], strides = [1, 1]} : vector<8x256xf32> to vector<1x256xf32>
    %188 = vector.broadcast %186 : f32 to vector<1x256xf32>
    %189 = arith.mulf %188, %187 : vector<1x256xf32>
    %190 = arith.addf %185, %189 : vector<1x256xf32>
    %c2_72 = arith.constant 2 : index
    %c2_73 = arith.constant 2 : index
    %191 = memref.load %arg2[%c2_72, %c2_73] : memref<4x8xf32, #tpu.memory_space<smem>>
    %192 = vector.extract_strided_slice %1 {offsets = [2, 0], sizes = [1, 256], strides = [1, 1]} : vector<8x256xf32> to vector<1x256xf32>
    %193 = vector.broadcast %191 : f32 to vector<1x256xf32>
    %194 = arith.mulf %193, %192 : vector<1x256xf32>
    %195 = arith.addf %190, %194 : vector<1x256xf32>
    %c2_74 = arith.constant 2 : index
    %c3_75 = arith.constant 3 : index
    %196 = memref.load %arg2[%c2_74, %c3_75] : memref<4x8xf32, #tpu.memory_space<smem>>
    %197 = vector.extract_strided_slice %1 {offsets = [3, 0], sizes = [1, 256], strides = [1, 1]} : vector<8x256xf32> to vector<1x256xf32>
    %198 = vector.broadcast %196 : f32 to vector<1x256xf32>
    %199 = arith.mulf %198, %197 : vector<1x256xf32>
    %200 = arith.addf %195, %199 : vector<1x256xf32>
    %c2_76 = arith.constant 2 : index
    %c4_77 = arith.constant 4 : index
    %201 = memref.load %arg2[%c2_76, %c4_77] : memref<4x8xf32, #tpu.memory_space<smem>>
    %202 = vector.extract_strided_slice %1 {offsets = [4, 0], sizes = [1, 256], strides = [1, 1]} : vector<8x256xf32> to vector<1x256xf32>
    %203 = vector.broadcast %201 : f32 to vector<1x256xf32>
    %204 = arith.mulf %203, %202 : vector<1x256xf32>
    %205 = arith.addf %200, %204 : vector<1x256xf32>
    %c2_78 = arith.constant 2 : index
    %c5_79 = arith.constant 5 : index
    %206 = memref.load %arg2[%c2_78, %c5_79] : memref<4x8xf32, #tpu.memory_space<smem>>
    %207 = vector.extract_strided_slice %1 {offsets = [5, 0], sizes = [1, 256], strides = [1, 1]} : vector<8x256xf32> to vector<1x256xf32>
    %208 = vector.broadcast %206 : f32 to vector<1x256xf32>
    %209 = arith.mulf %208, %207 : vector<1x256xf32>
    %210 = arith.addf %205, %209 : vector<1x256xf32>
    %c2_80 = arith.constant 2 : index
    %c6_81 = arith.constant 6 : index
    %211 = memref.load %arg2[%c2_80, %c6_81] : memref<4x8xf32, #tpu.memory_space<smem>>
    %212 = vector.extract_strided_slice %1 {offsets = [6, 0], sizes = [1, 256], strides = [1, 1]} : vector<8x256xf32> to vector<1x256xf32>
    %213 = vector.broadcast %211 : f32 to vector<1x256xf32>
    %214 = arith.mulf %213, %212 : vector<1x256xf32>
    %215 = arith.addf %210, %214 : vector<1x256xf32>
    %c2_82 = arith.constant 2 : index
    %c7_83 = arith.constant 7 : index
    %216 = memref.load %arg2[%c2_82, %c7_83] : memref<4x8xf32, #tpu.memory_space<smem>>
    %217 = vector.extract_strided_slice %1 {offsets = [7, 0], sizes = [1, 256], strides = [1, 1]} : vector<8x256xf32> to vector<1x256xf32>
    %218 = vector.broadcast %216 : f32 to vector<1x256xf32>
    %219 = arith.mulf %218, %217 : vector<1x256xf32>
    %220 = arith.addf %215, %219 : vector<1x256xf32>
    %c2_84 = arith.constant 2 : index
    %c0_85 = arith.constant 0 : index
    %221 = memref.load %arg3[%c2_84, %c0_85] : memref<4x8xf32, #tpu.memory_space<smem>>
    %222 = vector.extract_strided_slice %3 {offsets = [0, 0], sizes = [1, 256], strides = [1, 1]} : vector<8x256xf32> to vector<1x256xf32>
    %223 = vector.broadcast %221 : f32 to vector<1x256xf32>
    %224 = arith.mulf %223, %222 : vector<1x256xf32>
    %225 = arith.addf %220, %224 : vector<1x256xf32>
    %c2_86 = arith.constant 2 : index
    %c1_87 = arith.constant 1 : index
    %226 = memref.load %arg3[%c2_86, %c1_87] : memref<4x8xf32, #tpu.memory_space<smem>>
    %227 = vector.extract_strided_slice %3 {offsets = [1, 0], sizes = [1, 256], strides = [1, 1]} : vector<8x256xf32> to vector<1x256xf32>
    %228 = vector.broadcast %226 : f32 to vector<1x256xf32>
    %229 = arith.mulf %228, %227 : vector<1x256xf32>
    %230 = arith.addf %225, %229 : vector<1x256xf32>
    %c2_88 = arith.constant 2 : index
    %c2_89 = arith.constant 2 : index
    %231 = memref.load %arg3[%c2_88, %c2_89] : memref<4x8xf32, #tpu.memory_space<smem>>
    %232 = vector.extract_strided_slice %3 {offsets = [2, 0], sizes = [1, 256], strides = [1, 1]} : vector<8x256xf32> to vector<1x256xf32>
    %233 = vector.broadcast %231 : f32 to vector<1x256xf32>
    %234 = arith.mulf %233, %232 : vector<1x256xf32>
    %235 = arith.addf %230, %234 : vector<1x256xf32>
    %c2_90 = arith.constant 2 : index
    %c3_91 = arith.constant 3 : index
    %236 = memref.load %arg3[%c2_90, %c3_91] : memref<4x8xf32, #tpu.memory_space<smem>>
    %237 = vector.extract_strided_slice %3 {offsets = [3, 0], sizes = [1, 256], strides = [1, 1]} : vector<8x256xf32> to vector<1x256xf32>
    %238 = vector.broadcast %236 : f32 to vector<1x256xf32>
    %239 = arith.mulf %238, %237 : vector<1x256xf32>
    %240 = arith.addf %235, %239 : vector<1x256xf32>
    %c2_92 = arith.constant 2 : index
    %c4_93 = arith.constant 4 : index
    %241 = memref.load %arg3[%c2_92, %c4_93] : memref<4x8xf32, #tpu.memory_space<smem>>
    %242 = vector.extract_strided_slice %3 {offsets = [4, 0], sizes = [1, 256], strides = [1, 1]} : vector<8x256xf32> to vector<1x256xf32>
    %243 = vector.broadcast %241 : f32 to vector<1x256xf32>
    %244 = arith.mulf %243, %242 : vector<1x256xf32>
    %245 = arith.addf %240, %244 : vector<1x256xf32>
    %c2_94 = arith.constant 2 : index
    %c5_95 = arith.constant 5 : index
    %246 = memref.load %arg3[%c2_94, %c5_95] : memref<4x8xf32, #tpu.memory_space<smem>>
    %247 = vector.extract_strided_slice %3 {offsets = [5, 0], sizes = [1, 256], strides = [1, 1]} : vector<8x256xf32> to vector<1x256xf32>
    %248 = vector.broadcast %246 : f32 to vector<1x256xf32>
    %249 = arith.mulf %248, %247 : vector<1x256xf32>
    %250 = arith.addf %245, %249 : vector<1x256xf32>
    %c2_96 = arith.constant 2 : index
    %c6_97 = arith.constant 6 : index
    %251 = memref.load %arg3[%c2_96, %c6_97] : memref<4x8xf32, #tpu.memory_space<smem>>
    %252 = vector.extract_strided_slice %3 {offsets = [6, 0], sizes = [1, 256], strides = [1, 1]} : vector<8x256xf32> to vector<1x256xf32>
    %253 = vector.broadcast %251 : f32 to vector<1x256xf32>
    %254 = arith.mulf %253, %252 : vector<1x256xf32>
    %255 = arith.addf %250, %254 : vector<1x256xf32>
    %c2_98 = arith.constant 2 : index
    %c7_99 = arith.constant 7 : index
    %256 = memref.load %arg3[%c2_98, %c7_99] : memref<4x8xf32, #tpu.memory_space<smem>>
    %257 = vector.extract_strided_slice %3 {offsets = [7, 0], sizes = [1, 256], strides = [1, 1]} : vector<8x256xf32> to vector<1x256xf32>
    %258 = vector.broadcast %256 : f32 to vector<1x256xf32>
    %259 = arith.mulf %258, %257 : vector<1x256xf32>
    %260 = arith.addf %255, %259 : vector<1x256xf32>
    %cst_100 = arith.constant 0.000000e+00 : f32
    %261 = vector.broadcast %cst_100 : f32 to vector<1x256xf32>
    %262 = arith.maximumf %260, %261 : vector<1x256xf32>
    %c2_101 = arith.constant 2 : index
    %263 = memref.load %arg4[%c2_101] : memref<4xf32, #tpu.memory_space<smem>>
    %264 = vector.broadcast %263 : f32 to vector<1x256xf32>
    %265 = arith.mulf %264, %262 : vector<1x256xf32>
    %266 = arith.addf %178, %265 : vector<1x256xf32>
    %c3_102 = arith.constant 3 : index
    %267 = memref.load %arg5[%c3_102] : memref<4xf32, #tpu.memory_space<smem>>
    %c3_103 = arith.constant 3 : index
    %c0_104 = arith.constant 0 : index
    %268 = memref.load %arg2[%c3_103, %c0_104] : memref<4x8xf32, #tpu.memory_space<smem>>
    %269 = vector.extract_strided_slice %1 {offsets = [0, 0], sizes = [1, 256], strides = [1, 1]} : vector<8x256xf32> to vector<1x256xf32>
    %270 = vector.broadcast %268 : f32 to vector<1x256xf32>
    %271 = arith.mulf %270, %269 : vector<1x256xf32>
    %272 = vector.broadcast %267 : f32 to vector<1x256xf32>
    %273 = arith.addf %272, %271 : vector<1x256xf32>
    %c3_105 = arith.constant 3 : index
    %c1_106 = arith.constant 1 : index
    %274 = memref.load %arg2[%c3_105, %c1_106] : memref<4x8xf32, #tpu.memory_space<smem>>
    %275 = vector.extract_strided_slice %1 {offsets = [1, 0], sizes = [1, 256], strides = [1, 1]} : vector<8x256xf32> to vector<1x256xf32>
    %276 = vector.broadcast %274 : f32 to vector<1x256xf32>
    %277 = arith.mulf %276, %275 : vector<1x256xf32>
    %278 = arith.addf %273, %277 : vector<1x256xf32>
    %c3_107 = arith.constant 3 : index
    %c2_108 = arith.constant 2 : index
    %279 = memref.load %arg2[%c3_107, %c2_108] : memref<4x8xf32, #tpu.memory_space<smem>>
    %280 = vector.extract_strided_slice %1 {offsets = [2, 0], sizes = [1, 256], strides = [1, 1]} : vector<8x256xf32> to vector<1x256xf32>
    %281 = vector.broadcast %279 : f32 to vector<1x256xf32>
    %282 = arith.mulf %281, %280 : vector<1x256xf32>
    %283 = arith.addf %278, %282 : vector<1x256xf32>
    %c3_109 = arith.constant 3 : index
    %c3_110 = arith.constant 3 : index
    %284 = memref.load %arg2[%c3_109, %c3_110] : memref<4x8xf32, #tpu.memory_space<smem>>
    %285 = vector.extract_strided_slice %1 {offsets = [3, 0], sizes = [1, 256], strides = [1, 1]} : vector<8x256xf32> to vector<1x256xf32>
    %286 = vector.broadcast %284 : f32 to vector<1x256xf32>
    %287 = arith.mulf %286, %285 : vector<1x256xf32>
    %288 = arith.addf %283, %287 : vector<1x256xf32>
    %c3_111 = arith.constant 3 : index
    %c4_112 = arith.constant 4 : index
    %289 = memref.load %arg2[%c3_111, %c4_112] : memref<4x8xf32, #tpu.memory_space<smem>>
    %290 = vector.extract_strided_slice %1 {offsets = [4, 0], sizes = [1, 256], strides = [1, 1]} : vector<8x256xf32> to vector<1x256xf32>
    %291 = vector.broadcast %289 : f32 to vector<1x256xf32>
    %292 = arith.mulf %291, %290 : vector<1x256xf32>
    %293 = arith.addf %288, %292 : vector<1x256xf32>
    %c3_113 = arith.constant 3 : index
    %c5_114 = arith.constant 5 : index
    %294 = memref.load %arg2[%c3_113, %c5_114] : memref<4x8xf32, #tpu.memory_space<smem>>
    %295 = vector.extract_strided_slice %1 {offsets = [5, 0], sizes = [1, 256], strides = [1, 1]} : vector<8x256xf32> to vector<1x256xf32>
    %296 = vector.broadcast %294 : f32 to vector<1x256xf32>
    %297 = arith.mulf %296, %295 : vector<1x256xf32>
    %298 = arith.addf %293, %297 : vector<1x256xf32>
    %c3_115 = arith.constant 3 : index
    %c6_116 = arith.constant 6 : index
    %299 = memref.load %arg2[%c3_115, %c6_116] : memref<4x8xf32, #tpu.memory_space<smem>>
    %300 = vector.extract_strided_slice %1 {offsets = [6, 0], sizes = [1, 256], strides = [1, 1]} : vector<8x256xf32> to vector<1x256xf32>
    %301 = vector.broadcast %299 : f32 to vector<1x256xf32>
    %302 = arith.mulf %301, %300 : vector<1x256xf32>
    %303 = arith.addf %298, %302 : vector<1x256xf32>
    %c3_117 = arith.constant 3 : index
    %c7_118 = arith.constant 7 : index
    %304 = memref.load %arg2[%c3_117, %c7_118] : memref<4x8xf32, #tpu.memory_space<smem>>
    %305 = vector.extract_strided_slice %1 {offsets = [7, 0], sizes = [1, 256], strides = [1, 1]} : vector<8x256xf32> to vector<1x256xf32>
    %306 = vector.broadcast %304 : f32 to vector<1x256xf32>
    %307 = arith.mulf %306, %305 : vector<1x256xf32>
    %308 = arith.addf %303, %307 : vector<1x256xf32>
    %c3_119 = arith.constant 3 : index
    %c0_120 = arith.constant 0 : index
    %309 = memref.load %arg3[%c3_119, %c0_120] : memref<4x8xf32, #tpu.memory_space<smem>>
    %310 = vector.extract_strided_slice %3 {offsets = [0, 0], sizes = [1, 256], strides = [1, 1]} : vector<8x256xf32> to vector<1x256xf32>
    %311 = vector.broadcast %309 : f32 to vector<1x256xf32>
    %312 = arith.mulf %311, %310 : vector<1x256xf32>
    %313 = arith.addf %308, %312 : vector<1x256xf32>
    %c3_121 = arith.constant 3 : index
    %c1_122 = arith.constant 1 : index
    %314 = memref.load %arg3[%c3_121, %c1_122] : memref<4x8xf32, #tpu.memory_space<smem>>
    %315 = vector.extract_strided_slice %3 {offsets = [1, 0], sizes = [1, 256], strides = [1, 1]} : vector<8x256xf32> to vector<1x256xf32>
    %316 = vector.broadcast %314 : f32 to vector<1x256xf32>
    %317 = arith.mulf %316, %315 : vector<1x256xf32>
    %318 = arith.addf %313, %317 : vector<1x256xf32>
    %c3_123 = arith.constant 3 : index
    %c2_124 = arith.constant 2 : index
    %319 = memref.load %arg3[%c3_123, %c2_124] : memref<4x8xf32, #tpu.memory_space<smem>>
    %320 = vector.extract_strided_slice %3 {offsets = [2, 0], sizes = [1, 256], strides = [1, 1]} : vector<8x256xf32> to vector<1x256xf32>
    %321 = vector.broadcast %319 : f32 to vector<1x256xf32>
    %322 = arith.mulf %321, %320 : vector<1x256xf32>
    %323 = arith.addf %318, %322 : vector<1x256xf32>
    %c3_125 = arith.constant 3 : index
    %c3_126 = arith.constant 3 : index
    %324 = memref.load %arg3[%c3_125, %c3_126] : memref<4x8xf32, #tpu.memory_space<smem>>
    %325 = vector.extract_strided_slice %3 {offsets = [3, 0], sizes = [1, 256], strides = [1, 1]} : vector<8x256xf32> to vector<1x256xf32>
    %326 = vector.broadcast %324 : f32 to vector<1x256xf32>
    %327 = arith.mulf %326, %325 : vector<1x256xf32>
    %328 = arith.addf %323, %327 : vector<1x256xf32>
    %c3_127 = arith.constant 3 : index
    %c4_128 = arith.constant 4 : index
    %329 = memref.load %arg3[%c3_127, %c4_128] : memref<4x8xf32, #tpu.memory_space<smem>>
    %330 = vector.extract_strided_slice %3 {offsets = [4, 0], sizes = [1, 256], strides = [1, 1]} : vector<8x256xf32> to vector<1x256xf32>
    %331 = vector.broadcast %329 : f32 to vector<1x256xf32>
    %332 = arith.mulf %331, %330 : vector<1x256xf32>
    %333 = arith.addf %328, %332 : vector<1x256xf32>
    %c3_129 = arith.constant 3 : index
    %c5_130 = arith.constant 5 : index
    %334 = memref.load %arg3[%c3_129, %c5_130] : memref<4x8xf32, #tpu.memory_space<smem>>
    %335 = vector.extract_strided_slice %3 {offsets = [5, 0], sizes = [1, 256], strides = [1, 1]} : vector<8x256xf32> to vector<1x256xf32>
    %336 = vector.broadcast %334 : f32 to vector<1x256xf32>
    %337 = arith.mulf %336, %335 : vector<1x256xf32>
    %338 = arith.addf %333, %337 : vector<1x256xf32>
    %c3_131 = arith.constant 3 : index
    %c6_132 = arith.constant 6 : index
    %339 = memref.load %arg3[%c3_131, %c6_132] : memref<4x8xf32, #tpu.memory_space<smem>>
    %340 = vector.extract_strided_slice %3 {offsets = [6, 0], sizes = [1, 256], strides = [1, 1]} : vector<8x256xf32> to vector<1x256xf32>
    %341 = vector.broadcast %339 : f32 to vector<1x256xf32>
    %342 = arith.mulf %341, %340 : vector<1x256xf32>
    %343 = arith.addf %338, %342 : vector<1x256xf32>
    %c3_133 = arith.constant 3 : index
    %c7_134 = arith.constant 7 : index
    %344 = memref.load %arg3[%c3_133, %c7_134] : memref<4x8xf32, #tpu.memory_space<smem>>
    %345 = vector.extract_strided_slice %3 {offsets = [7, 0], sizes = [1, 256], strides = [1, 1]} : vector<8x256xf32> to vector<1x256xf32>
    %346 = vector.broadcast %344 : f32 to vector<1x256xf32>
    %347 = arith.mulf %346, %345 : vector<1x256xf32>
    %348 = arith.addf %343, %347 : vector<1x256xf32>
    %cst_135 = arith.constant 0.000000e+00 : f32
    %349 = vector.broadcast %cst_135 : f32 to vector<1x256xf32>
    %350 = arith.maximumf %348, %349 : vector<1x256xf32>
    %c3_136 = arith.constant 3 : index
    %351 = memref.load %arg4[%c3_136] : memref<4xf32, #tpu.memory_space<smem>>
    %352 = vector.broadcast %351 : f32 to vector<1x256xf32>
    %353 = arith.mulf %352, %350 : vector<1x256xf32>
    %354 = arith.addf %266, %353 : vector<1x256xf32>
    %c0_137 = arith.constant 0 : index
    %355 = memref.load %arg6[%c0_137] : memref<1xf32, #tpu.memory_space<smem>>
    %356 = vector.broadcast %355 : f32 to vector<1x256xf32>
    %357 = arith.addf %354, %356 : vector<1x256xf32>
    %358 = arith.negf %357 : vector<1x256xf32>
    %359 = math.exp %358 : vector<1x256xf32>
    %cst_138 = arith.constant 1.000000e+00 : f32
    %360 = vector.broadcast %cst_138 : f32 to vector<1x256xf32>
    %361 = arith.addf %360, %359 : vector<1x256xf32>
    %362 = arith.divf %360, %361 : vector<1x256xf32>
    %363 = vector.broadcast %362 : vector<1x256xf32> to vector<8x256xf32>
    %364 = arith.mulf %3, %363 : vector<8x256xf32>
    %c0_139 = arith.constant 0 : index
    %c0_140 = arith.constant 0 : index
    %c0_141 = arith.constant 0 : index
    %365 = vector.load %arg9[%c0_139, %c0_140, %c0_141] : memref<1x8x256xf32, #tpu.memory_space<vmem>>, vector<1x8x256xf32>
    %366 = vector.shape_cast %365 : vector<1x8x256xf32> to vector<8x256xf32>
    %367 = vector.shape_cast %364 : vector<8x256xf32> to vector<1x8x256xf32>
    tpu.vector_store %arg9[%c0_139, %c0_140, %c0_141], %367 {strides = array<i32>} : memref<1x8x256xf32, #tpu.memory_space<vmem>>, vector<1x8x256xf32>,
    return
  }
  func.func @transform_0(%arg0: i32, %arg1: i32) -> (i32, i32) {
    %c0_i32 = arith.constant 0 : i32
    %c0_i32_0 = arith.constant 0 : i32
    %c0_i32_1 = arith.constant 0 : i32
    return %c0_i32, %c0_i32_0 : i32, i32
  }
  func.func @transform_1(%arg0: i32, %arg1: i32) -> (i32, i32) {
    %c0_i32 = arith.constant 0 : i32
    %c0_i32_0 = arith.constant 0 : i32
    %c0_i32_1 = arith.constant 0 : i32
    return %c0_i32, %c0_i32_0 : i32, i32
  }
  func.func @transform_2(%arg0: i32, %arg1: i32) -> i32 {
    %c0_i32 = arith.constant 0 : i32
    %c0_i32_0 = arith.constant 0 : i32
    return %c0_i32 : i32
  }
  func.func @transform_3(%arg0: i32, %arg1: i32) -> i32 {
    %c0_i32 = arith.constant 0 : i32
    %c0_i32_0 = arith.constant 0 : i32
    return %c0_i32 : i32
  }
  func.func @transform_4(%arg0: i32, %arg1: i32) -> i32 {
    %c0_i32 = arith.constant 0 : i32
    %c0_i32_0 = arith.constant 0 : i32
    return %c0_i32 : i32
  }
  func.func @transform_5(%arg0: i32, %arg1: i32) -> (i32, i32, i32) {
    %c0_i32 = arith.constant 0 : i32
    %c0_i32_0 = arith.constant 0 : i32
    return %arg0, %c0_i32, %arg1 : i32, i32, i32
  }
  func.func @transform_6(%arg0: i32, %arg1: i32) -> (i32, i32, i32) {
    %c0_i32 = arith.constant 0 : i32
    %c0_i32_0 = arith.constant 0 : i32
    return %arg0, %c0_i32, %arg1 : i32, i32, i32
  }
  func.func @transform_7(%arg0: i32, %arg1: i32) -> (i32, i32, i32) {
    %c0_i32 = arith.constant 0 : i32
    %c0_i32_0 = arith.constant 0 : i32
    return %arg0, %c0_i32, %arg1 : i32, i32, i32
  }
}

</mosaic_0001>

<bundles_post_ra>
// kernel: attention_block_forward.1
= control target key start
LH: loop header
LB: loop body
LE: loop exit
PB: predicated region body
PF: predicated region fallthrough
CT: control target
= control target key end

     0   :  { %s2177_s0 = inlined_call_operand.vmem [shape: f32[4,8], index: 0, kind: input, shape index: {}]   ;;  %s2178_s1 = inlined_call_operand.vmem [shape: f32[4,8], index: 1, kind: input, shape index: {}]   ;;  %s2179_s2 = inlined_call_operand.vmem [shape: f32[4], index: 2, kind: input, shape index: {}]   ;;  %s2180_s3 = inlined_call_operand.vmem [shape: f32[4], index: 3, kind: input, shape index: {}]   ;;  %s2181_s4 = inlined_call_operand.<no memory space> [shape: f32[1], index: 4, kind: input, shape index: {}]   ;;  %s2182_s5 = inlined_call_operand.vmem [shape: f32[2,8,256], index: 5, kind: input, shape index: {}]   ;;  %s2183_s6 = inlined_call_operand.vmem [shape: f32[2,8,256], index: 6, kind: input, shape index: {}]   ;;  %s2184_s7 = inlined_call_operand.vmem [shape: f32[2,8,256], index: 7, kind: output, shape index: {}]  }
   0x1   :  { %12 = sst [smem:[#allocation2]] %s2181_s4 }
   0x2   :  { %13 = vsyncpa [#allocation4], 0 }
   0x3   :  { %14 = vsyncpa [#allocation6], 0 }
   0x4   :  { %15 = vsyncpa [#allocation9], 0  ;;  %s1653_s26 = smov 0   ;;  %s1655_s27 = smov 0  }
   0x5   :  { %s1657_s28 = smov 0  }
   0x6 LB: > { %s251_s30 = sshll.u32 %s2178_s1, 4  ;;  %s1343_s8 = sadd.s32 4294967295, %s1604_s28   ;;  %s1604_s28 = sphi %s1657_s28, %s21_s28   ;;  %s1600_s27 = sphi %s1655_s27, %s2195_s27   ;;  %s1596_s26 = sphi %s1653_s26, %s2194_s26   ;;  %s252_s30 = int_to_ptr.vmem [resolvable:$true] %s251_s30 }
   0x7   : > { %p1345_p0 = scmp.ge.s32.totalorder %s1604_s28, 1  ;;  %p227_p1 = scmp.lt.s32.totalorder %s1604_s28, 3 }
   0x8   : > { %p1674_p2 = scmp.eq.s32.totalorder %s1343_s8, 0  ;;  %s33_s11 = sadd.s32 1, %s1600_s27 }
   0x9   : > { %p1678_p3 = pnand %p1345_p0, %p227_p1  ;;  %s240_s14 = sshll.u32 %s2177_s0, 4  ;;  %s241_s14 = int_to_ptr.vmem [resolvable:$true] %s240_s14 }
   0xa   : > { %s2188_s9 = scalar_select %p1674_p2, 1, 0 }
   0xb   : > { %s2189_s10 = scalar_select %p1678_p3, 1, 0 }
   0xc   : > { %p1453_p4 = pneg %p1678_p3  ;;  %p1694_p6 = scmp.ge.s32.totalorder %s33_s11, 2 }
   0xd   : > { %s262_s19 = sshll.u32 %s2179_s2, 4  ;;  %s1510_s20 = scalar_lea.vmem %s252_s30, 64  ;;  %s263_s19 = int_to_ptr.vmem [resolvable:$true] %s262_s19 }
   0xe   : > { %p1690_p5 = pnand %p1674_p2, %p1453_p4  ;;  %p1511_p7 = scmp.ne.s32.totalorder %s252_s30, %s1510_s20 }
   0xf   : > { %p1518_p11 = scmp.lt.s32.totalorder %s252_s30, %s252_s30  ;;  %p1519_p12 = scmp.lt.s32.totalorder %s1510_s20, %s1510_s20 }
  0x10   : > { %p1512_p8 = pneg %p1690_p5 }
  0x11   : > { %p1520_p13 = por %p1519_p12, %p1518_p11 }
  0x12   : > { %p1513_p9 = pnand %p1512_p8, %p1511_p7 }
  0x14   : > { %p1514_p10 = pneg %p1513_p9 }
  0x16   : > { %p1521_p0 = pnand %p1520_p13, %p1514_p10 }
  0x18   : > { %1524 = shalt.err (!%p1521_p0)
}
  0x19   : > { %s1606_s21 = smov [#allocation5]   ;;  %s2197_s11 = smov (%p1694_p6, %s33_s11), 0 }
  0x1a   : > { %1459 = dma.vmem_to_smem (!%p1690_p5), %s252_s30, 64, %s1606_s21, [#allocation6]  }
  0x1b   : > { %s1525_s22 = scalar_lea.vmem %s241_s14, 64  ;;  %p1533_p9 = scmp.lt.s32.totalorder %s241_s14, %s241_s14 }
  0x1c   : > { %p1526_p1 = scmp.ne.s32.totalorder %s241_s14, %s1525_s22  ;;  %p1534_p2 = scmp.lt.s32.totalorder %s1525_s22, %s1525_s22 }
  0x1e   : > { %p1528_p4 = pnand %p1526_p1, %p1512_p8  ;;  %p1535_p11 = por %p1534_p2, %p1533_p9 }
  0x20   : > { %p1529_p7 = pneg %p1528_p4 }
  0x22   : > { %p1536_p10 = pnand %p1535_p11, %p1529_p7 }
  0x24   : > { %1539 = shalt.err (!%p1536_p10)
}
  0x25   : > { %s1607_s23 = smov [#allocation3]   ;;  %s1540_s24 = scalar_lea.vmem %s263_s19, 16 }
  0x26   : > { %1456 = dma.vmem_to_smem (!%p1690_p5), %s241_s14, 64, %s1607_s23, [#allocation4]  }
  0x27   : > { %p1541_p6 = scmp.ne.s32.totalorder %s263_s19, %s1540_s24  ;;  %p1548_p0 = scmp.lt.s32.totalorder %s263_s19, %s263_s19 }
  0x28   : > { %p1549_p1 = scmp.lt.s32.totalorder %s1540_s24, %s1540_s24 }
  0x29   : > { %p1543_p12 = pnand %p1541_p6, %p1512_p8 }
  0x2a   : > { %p1550_p4 = por %p1549_p1, %p1548_p0 }
  0x2b   : > { %p1544_p13 = pneg %p1543_p12 }
  0x2d   : > { %p1551_p3 = pnand %p1550_p4, %p1544_p13 }
  0x2f   : > { %1554 = shalt.err (!%p1551_p3)
}
  0x30   : > { %s1608_s25 = smov [#allocation7]   ;;  %s273_s30 = sshll.u32 %s2180_s3, 4  ;;  %s274_s30 = int_to_ptr.vmem [resolvable:$true] %s273_s30 }
  0x31   : > { %1462 = dma.vmem_to_smem (!%p1690_p5), %s263_s19, 16, %s1608_s25, [#allocation6]  }
  0x32   : > { %s1555_s8 = scalar_lea.vmem %s274_s30, 16  ;;  %p1563_p11 = scmp.lt.s32.totalorder %s274_s30, %s274_s30 }
  0x33   : > { %p1556_p2 = scmp.ne.s32.totalorder %s274_s30, %s1555_s8  ;;  %p1564_p10 = scmp.lt.s32.totalorder %s1555_s8, %s1555_s8 }
  0x35   : > { %p1558_p7 = pnand %p1556_p2, %p1512_p8  ;;  %p1565_p6 = por %p1564_p10, %p1563_p11 }
  0x37   : > { %p1559_p9 = pneg %p1558_p7 }
  0x39   : > { %p1566_p3 = pnand %p1565_p6, %p1559_p9 }
  0x3b   : > { %1569 = shalt.err (!%p1566_p3)
}
  0x3c   : > { %s1609_s12 = smov [#allocation8]   ;;  %p2192_p12 = scmp.ne.s32.totalorder %s2189_s10, 0 }
  0x3d   : > { %1465 = dma.vmem_to_smem (!%p1690_p5), %s274_s30, 16, %s1609_s12, [#allocation9]  }
  0x3e   : > { %315 = sbr.rel (%p2192_p12) target bundleno = 241 (0xf1), region = 48  ;;  %p2193_p13 = scmp.ne.s32.totalorder (!%p2192_p12), %s2188_s9, 0 }
  0x45   : > { %1583 = dma.done.wait (%p2193_p13), [#allocation4], 64  }
  0x46   : > { %1585 = vsyncadd (%p2193_p13), [#allocation4], 4294967232 }
  0x47   : > { %1587 = dma.done.wait (%p2193_p13), [#allocation6], 80  }
  0x48   : > { %1589 = vsyncadd (%p2193_p13), [#allocation6], 4294967216 }
  0x49   : > { %1591 = dma.done.wait (%p2193_p13), [#allocation9], 16  }
  0x4a   : > { %1593 = vsyncadd (%p2193_p13), [#allocation9], 4294967280 }
  0x4b   : > { %333 = sfence }
  0x4c   : > { %p378_p5 = scmp.lt.s32.totalorder %s1596_s26, 1  ;;  %s411_s10 = sld [smem:[#allocation8]] }
  0x4d   : > { %s412_s13 = sld [smem:[#allocation3]]  ;;  %s1362_s14 = sld [smem:[#allocation3 + $0x1]] }
  0x4e   : > { %s2199_s26 = smov (!%p378_p5, %s1596_s26), 1  ;;  %s1363_s15 = sld [smem:[#allocation3 + $0x2]] }
  0x4f   : > { %s1364_s16 = sld [smem:[#allocation3 + $0x3]]  ;;  %s1746_s17 = sshll.u32 %s2199_s26, 4 }
  0x50   : > { %s1748_s18 = sld [smem:[#allocation3 + $0x4]]  ;;  %s385_s9 = scalar_lea.vmem %s2182_s5, %s1746_s17 }
  0x51   : > { %v1754_v0 = vld [vmem:[%s385_s9] sm:$0xff]  ;;  %v1756_v1 = vld [vmem:[%s385_s9 + $0x8] sm:$0xff]  ;;  %s1758_s21 = sld [smem:[#allocation3 + $0x5]]  ;;  %s1760_s22 = sld [smem:[#allocation3 + $0x6]] }
  0x52   : > { %v416_v3 = vstv %s411_s10  ;;  %s1762_s26 = sld [smem:[#allocation3 + $0x7]]  ;;  %s1768_s23 = sld [smem:[#allocation5]] }
  0x53   : > { %v413_v2 = vstv %s412_s13  ;;  %v420_v4 = vstv %s1362_s14  ;;  %s1770_s24 = sld [smem:[#allocation5 + $0x1]]  ;;  %s1782_s25 = sld [smem:[#allocation5 + $0x2]] }
  0x54   : > { %v414_v5 = vmul.f32 %v413_v2, %v1754_v0  ;;  %v415_v6 = vmul.f32 %v413_v2, %v1756_v1  ;;  %v421_v7 = vmul.f32 %v420_v4, %v1754_v0  ;;  %v422_v8 = vmul.f32 %v420_v4, %v1756_v1  ;;  %s1784_s4 = sld [smem:[#allocation5 + $0x3]]  ;;  %s395_s8 = scalar_lea.vmem %s2183_s6, %s1746_s17 }
  0x55   : > { %v432_v9 = vstv %s1363_s15  ;;  %v444_v10 = vstv %s1364_s16  ;;  %s1792_s12 = sld [smem:[#allocation5 + $0x4]]  ;;  %s1794_s10 = sld [smem:[#allocation5 + $0x5]]  ;;  %v1798_v43 = vld [vmem:[%s395_s8] sm:$0xff]  ;;  %v1800_v44 = vld [vmem:[%s395_s8 + $0x8] sm:$0xff] }
  0x56   : > { %v417_v11 = vadd.f32 %v416_v3, %v414_v5  ;;  %v418_v12 = vadd.f32 %v416_v3, %v415_v6  ;;  %v425_v13 = vrot.slane %v421_v7, 1  ;;  %v426_v14 = vrot.slane %v422_v8, 1  ;;  %s1808_s13 = sld [smem:[#allocation5 + $0x6]]  ;;  %s1815_s14 = sld [smem:[#allocation5 + $0x7]] }
  0x57   : > { %v433_v15 = vmul.f32 %v432_v9, %v1754_v0  ;;  %v434_v16 = vmul.f32 %v432_v9, %v1756_v1  ;;  %v445_v17 = vmul.f32 %v444_v10, %v1754_v0  ;;  %v446_v18 = vmul.f32 %v444_v10, %v1756_v1  ;;  %s1820_s15 = sld [smem:[#allocation3 + $0x80]]  ;;  %s1823_s16 = sld [smem:[#allocation8 + $0x1]] }
  0x58   : > { %v429_v19 = vadd.f32 %v425_v13, %v417_v11  ;;  %v430_v20 = vadd.f32 %v426_v14, %v418_v12  ;;  %v456_v21 = vstv %s1748_s18  ;;  %v468_v22 = vstv %s1758_s21  ;;  %s1825_s18 = sld [smem:[#allocation3 + $0x81]]  ;;  %s1829_s19 = sld [smem:[#allocation3 + $0x82]] }
  0x59   : > { %v437_v23 = vrot.slane %v433_v15, 2  ;;  %v438_v24 = vrot.slane %v434_v16, 2  ;;  %v449_v25 = vrot.slane %v445_v17, 3  ;;  %v450_v26 = vrot.slane %v446_v18, 3  ;;  %s1831_s20 = sld [smem:[#allocation3 + $0x83]]  ;;  %s1845_s9 = sld [smem:[#allocation3 + $0x84]] }
  0x5a   : > { %v457_v27 = vmul.f32 %v456_v21, %v1754_v0  ;;  %v458_v28 = vmul.f32 %v456_v21, %v1756_v1  ;;  %v469_v29 = vmul.f32 %v468_v22, %v1754_v0  ;;  %v470_v30 = vmul.f32 %v468_v22, %v1756_v1  ;;  %s1847_s21 = sld [smem:[#allocation3 + $0x85]]  ;;  %s1890_s29 = sld [smem:[#allocation5 + $0x84]] }
  0x5b   : > { %v441_v31 = vadd.f32 %v437_v23, %v429_v19  ;;  %v442_v32 = vadd.f32 %v438_v24, %v430_v20  ;;  %v480_v33 = vstv %s1760_s22  ;;  %v492_v34 = vstv %s1762_s26  ;;  %s1865_s22 = sld [smem:[#allocation3 + $0x86]]  ;;  %s1867_s26 = sld [smem:[#allocation3 + $0x87]] }
  0x5c   : > { %v461_v35 = vrot.slane %v457_v27, 4  ;;  %v462_v36 = vrot.slane %v458_v28, 4  ;;  %v473_v37 = vrot.slane %v469_v29, 5  ;;  %v474_v38 = vrot.slane %v470_v30, 5  ;;  %s1898_s30 = sld [smem:[#allocation5 + $0x85]]  ;;  %s1902_s8 = sld [smem:[#allocation7]] }
  0x5d   : > { %v453_v39 = vadd.f32 %v449_v25, %v441_v31  ;;  %v454_v40 = vadd.f32 %v450_v26, %v442_v32  ;;  %v481_v41 = vmul.f32 %v480_v33, %v1754_v0  ;;  %v482_v42 = vmul.f32 %v480_v33, %v1756_v1 }
  0x5e   : > { %v493_v45 = vmul.f32 %v492_v34, %v1754_v0  ;;  %v494_v46 = vmul.f32 %v492_v34, %v1756_v1  ;;  %v504_v47 = vstv %s1768_s23  ;;  %v510_v48 = vstv %s1770_s24  ;;  %s1869_s23 = sld [smem:[#allocation5 + $0x80]]  ;;  %s1874_s24 = sld [smem:[#allocation5 + $0x81]] }
  0x5f   : > { %v465_v49 = vadd.f32 %v461_v35, %v453_v39  ;;  %v466_v50 = vadd.f32 %v462_v36, %v454_v40  ;;  %v485_v51 = vrot.slane %v481_v41, 6  ;;  %v486_v52 = vrot.slane %v482_v42, 6 }
  0x60   : > { %v497_v53 = vrot.slane %v493_v45, 7  ;;  %v498_v54 = vrot.slane %v494_v46, 7  ;;  %v511_v57 = vmul.f32 %v510_v48, %v1798_v43  ;;  %v512_v58 = vmul.f32 %v510_v48, %v1800_v44 }
  0x61   : > { %v477_v55 = vadd.f32 %v473_v37, %v465_v49  ;;  %v478_v56 = vadd.f32 %v474_v38, %v466_v50  ;;  %v505_v59 = vmul.f32 %v504_v47, %v1798_v43  ;;  %v522_v60 = vstv %s1782_s25  ;;  %s1884_s25 = sld [smem:[#allocation5 + $0x82]] }
  0x62   : > { %v534_v61 = vstv %s1784_s4  ;;  %v506_v2 = vmul.f32 %v504_v47, %v1800_v44  ;;  %v546_v3 = vstv %s1792_s12  ;;  %v515_v4 = vrot.slane %v511_v57, 1  ;;  %s1886_s4 = sld [smem:[#allocation5 + $0x83]]  ;;  %s1906_s12 = sld [smem:[#allocation5 + $0x86]] }
  0x63   : > { %v489_v62 = vadd.f32 %v485_v51, %v477_v55  ;;  %v490_v63 = vadd.f32 %v486_v52, %v478_v56  ;;  %v523_v5 = vmul.f32 %v522_v60, %v1798_v43  ;;  %v524_v6 = vmul.f32 %v522_v60, %v1800_v44 }
  0x64   : > { %v558_v7 = vstv %s1794_s10  ;;  %v516_v10 = vrot.slane %v512_v58, 1  ;;  %v535_v11 = vmul.f32 %v534_v61, %v1798_v43  ;;  %v536_v12 = vmul.f32 %v534_v61, %v1800_v44  ;;  %s1911_s10 = sld [smem:[#allocation5 + $0x87]] }
  0x65   : > { %v501_v8 = vadd.f32 %v497_v53, %v489_v62  ;;  %v502_v9 = vadd.f32 %v498_v54, %v490_v63  ;;  %v547_v13 = vmul.f32 %v546_v3, %v1798_v43  ;;  %v527_v16 = vrot.slane %v523_v5, 2 }
  0x66   : > { %v548_v17 = vmul.f32 %v546_v3, %v1800_v44  ;;  %v528_v18 = vrot.slane %v524_v6, 2  ;;  %v559_v19 = vmul.f32 %v558_v7, %v1798_v43  ;;  %v539_v22 = vrot.slane %v535_v11, 3 }
  0x67   : > { %v507_v14 = vadd.f32 %v505_v59, %v501_v8  ;;  %v508_v15 = vadd.f32 %v506_v2, %v502_v9  ;;  %v570_v23 = vstv %s1808_s13  ;;  %v540_v24 = vrot.slane %v536_v12, 3  ;;  %s1916_s13 = sld [smem:[#allocation3 + $0x100]] }
  0x68   : > { %v551_v25 = vrot.slane %v547_v13, 4  ;;  %v552_v27 = vrot.slane %v548_v17, 4  ;;  %v1837_v28 = vmul.f32 %v558_v7, %v1800_v44  ;;  %v582_v29 = vstv %s1815_s14  ;;  %s1920_s14 = sld [smem:[#allocation8 + $0x2]] }
  0x69   : > { %v519_v20 = vadd.f32 %v515_v4, %v507_v14  ;;  %v520_v21 = vadd.f32 %v516_v10, %v508_v15  ;;  %v563_v30 = vrot.slane %v559_v19, 5  ;;  %v571_v31 = vmul.f32 %v570_v23, %v1798_v43 }
  0x6a   : > { %v1842_v32 = vmul.f32 %v570_v23, %v1800_v44  ;;  %v601_v33 = vstv %s1820_s15  ;;  %v604_v38 = vstv %s1823_s16  ;;  %v608_v39 = vstv %s1825_s18  ;;  %s1922_s15 = sld [smem:[#allocation3 + $0x101]]  ;;  %s1929_s16 = sld [smem:[#allocation3 + $0x102]] }
  0x6b   : > { %v531_v26 = vadd.f32 %v527_v16, %v519_v20  ;;  %v532_v34 = vadd.f32 %v528_v18, %v520_v21  ;;  %v602_v36 = vmul.f32 %v601_v33, %v1754_v0  ;;  %v603_v37 = vmul.f32 %v601_v33, %v1756_v1  ;;  %s1931_s18 = sld [smem:[#allocation3 + $0x103]] }
  0x6c   : > { %v620_v40 = vstv %s1829_s19  ;;  %v632_v41 = vstv %s1831_s20  ;;  %v564_v42 = vrot.slane %v1837_v28, 5  ;;  %v1857_v45 = vmul.f32 %v582_v29, %v1798_v43  ;;  %s1953_s19 = sld [smem:[#allocation3 + $0x104]]  ;;  %s1955_s20 = sld [smem:[#allocation3 + $0x105]] }
  0x6d   : > { %v543_v35 = vadd.f32 %v539_v22, %v531_v26  ;;  %v605_v46 = vadd.f32 %v604_v38, %v602_v36  ;;  %v606_v47 = vadd.f32 %v604_v38, %v603_v37  ;;  %v609_v48 = vmul.f32 %v608_v39, %v1754_v0 }
  0x6e   : > { %v610_v49 = vmul.f32 %v608_v39, %v1756_v1  ;;  %v621_v50 = vmul.f32 %v620_v40, %v1754_v0  ;;  %v622_v51 = vmul.f32 %v620_v40, %v1756_v1  ;;  %v544_v52 = vadd.f32 %v540_v24, %v532_v34 }
  0x6f   : > { %v555_v53 = vadd.f32 %v551_v25, %v543_v35  ;;  %v633_v54 = vmul.f32 %v632_v41, %v1754_v0  ;;  %v634_v55 = vmul.f32 %v632_v41, %v1756_v1  ;;  %v613_v56 = vrot.slane %v609_v48, 1 }
  0x70   : > { %v614_v57 = vrot.slane %v610_v49, 1  ;;  %v625_v58 = vrot.slane %v621_v50, 2  ;;  %v626_v59 = vrot.slane %v622_v51, 2  ;;  %v575_v60 = vrot.slane %v571_v31, 6 }
  0x71   : > { %v1872_v61 = vmul.f32 %v582_v29, %v1800_v44  ;;  %v637_v62 = vrot.slane %v633_v54, 3  ;;  %v638_v63 = vrot.slane %v634_v55, 3  ;;  %v617_v2 = vadd.f32 %v613_v56, %v605_v46 }
  0x72   : > { %v618_v3 = vadd.f32 %v614_v57, %v606_v47  ;;  %v644_v4 = vstv %s1845_s9  ;;  %v656_v5 = vstv %s1847_s21  ;;  %v556_v6 = vadd.f32 %v552_v27, %v544_v52  ;;  %s1977_s9 = sld [smem:[#allocation3 + $0x106]]  ;;  %s1979_s21 = sld [smem:[#allocation3 + $0x107]] }
  0x73   : > { %v567_v7 = vadd.f32 %v563_v30, %v555_v53  ;;  %v645_v8 = vmul.f32 %v644_v4, %v1754_v0  ;;  %v646_v9 = vmul.f32 %v644_v4, %v1756_v1  ;;  %v629_v10 = vadd.f32 %v625_v58, %v617_v2 }
  0x74   : > { %v630_v11 = vadd.f32 %v626_v59, %v618_v3  ;;  %v657_v12 = vmul.f32 %v656_v5, %v1754_v0  ;;  %v658_v13 = vmul.f32 %v656_v5, %v1756_v1  ;;  %v576_v14 = vrot.slane %v1842_v32, 6 }
  0x75   : > { %v587_v15 = vrot.slane %v1857_v45, 7  ;;  %v649_v16 = vrot.slane %v645_v8, 4  ;;  %v650_v17 = vrot.slane %v646_v9, 4  ;;  %v641_v18 = vadd.f32 %v637_v62, %v629_v10 }
  0x76   : > { %v642_v19 = vadd.f32 %v638_v63, %v630_v11  ;;  %v661_v20 = vrot.slane %v657_v12, 5  ;;  %v662_v21 = vrot.slane %v658_v13, 5  ;;  %v568_v22 = vadd.f32 %v564_v42, %v556_v6 }
  0x77   : > { %v579_v23 = vadd.f32 %v575_v60, %v567_v7  ;;  %v668_v24 = vstv %s1865_s22  ;;  %v680_v25 = vstv %s1867_s26  ;;  %v653_v26 = vadd.f32 %v649_v16, %v641_v18  ;;  %s1981_s22 = sld [smem:[#allocation5 + $0x100]]  ;;  %s1985_s26 = sld [smem:[#allocation5 + $0x101]] }
  0x78   : > { %v654_v27 = vadd.f32 %v650_v17, %v642_v19  ;;  %v669_v28 = vmul.f32 %v668_v24, %v1754_v0  ;;  %v670_v29 = vmul.f32 %v668_v24, %v1756_v1  ;;  %v681_v30 = vmul.f32 %v680_v25, %v1754_v0 }
  0x79   : > { %v682_v31 = vmul.f32 %v680_v25, %v1756_v1  ;;  %v692_v32 = vstv %s1869_s23  ;;  %v698_v33 = vstv %s1874_s24  ;;  %v665_v34 = vadd.f32 %v661_v20, %v653_v26  ;;  %s1991_s23 = sld [smem:[#allocation5 + $0x102]]  ;;  %s1995_s24 = sld [smem:[#allocation5 + $0x103]] }
  0x7a   : > { %v666_v35 = vadd.f32 %v662_v21, %v654_v27  ;;  %v673_v36 = vrot.slane %v669_v28, 6  ;;  %v674_v37 = vrot.slane %v670_v29, 6  ;;  %v685_v38 = vrot.slane %v681_v30, 7 }
  0x7b   : > { %v686_v39 = vrot.slane %v682_v31, 7  ;;  %v693_v40 = vmul.f32 %v692_v32, %v1798_v43  ;;  %v694_v41 = vmul.f32 %v692_v32, %v1800_v44  ;;  %v699_v46 = vmul.f32 %v698_v33, %v1798_v43 }
  0x7c   : > { %v677_v42 = vadd.f32 %v673_v36, %v665_v34  ;;  %v678_v45 = vadd.f32 %v674_v37, %v666_v35  ;;  %v700_v47 = vmul.f32 %v698_v33, %v1800_v44  ;;  %v580_v48 = vadd.f32 %v576_v14, %v568_v22 }
  0x7d   : > { %v588_v49 = vrot.slane %v1872_v61, 7  ;;  %v710_v50 = vstv %s1884_s25  ;;  %v703_v53 = vrot.slane %v699_v46, 1  ;;  %v722_v54 = vstv %s1886_s4  ;;  %s1997_s25 = sld [smem:[#allocation5 + $0x104]]  ;;  %s2001_s4 = sld [smem:[#allocation5 + $0x105]] }
  0x7e   : > { %v689_v51 = vadd.f32 %v685_v38, %v677_v42  ;;  %v690_v52 = vadd.f32 %v686_v39, %v678_v45  ;;  %v704_v55 = vrot.slane %v700_v47, 1  ;;  %v711_v56 = vmul.f32 %v710_v50, %v1798_v43 }
  0x7f   : > { %v712_v57 = vmul.f32 %v710_v50, %v1800_v44  ;;  %v734_v58 = vstv %s1890_s29  ;;  %v1918_v59 = vadd.f32 %v587_v15, %v579_v23  ;;  %v1924_v62 = vadd.f32 %v588_v49, %v580_v48  ;;  %s2013_s29 = sld [smem:[#allocation5 + $0x106]] }
  0x80   : > { %v695_v60 = vadd.f32 %v693_v40, %v689_v51  ;;  %v696_v61 = vadd.f32 %v694_v41, %v690_v52  ;;  %v723_v63 = vmul.f32 %v722_v54, %v1798_v43  ;;  %v724_v2 = vmul.f32 %v722_v54, %v1800_v44 }
  0x81   : > { %v746_v3 = vstv %s1898_s30  ;;  %v715_v5 = vrot.slane %v711_v56, 2  ;;  %v735_v6 = vmul.f32 %v734_v58, %v1798_v43  ;;  %v736_v7 = vmul.f32 %v734_v58, %v1800_v44  ;;  %s2017_s30 = sld [smem:[#allocation5 + $0x107]] }
  0x82   : > { %v707_v4 = vadd.f32 %v703_v53, %v695_v60  ;;  %v708_v8 = vadd.f32 %v704_v55, %v696_v61  ;;  %v716_v9 = vrot.slane %v712_v57, 2  ;;  %v596_v10 = vstv %s1902_s8  ;;  %s1429_s8 = sld [smem:[#allocation7 + $0x3]] }
  0x83   : > { %v1937_v11 = vmul.f32 %v746_v3, %v1798_v43  ;;  %v1940_v12 = vmul.f32 %v746_v3, %v1800_v44  ;;  %v758_v13 = vstv %s1906_s12  ;;  %v593_v14 = vmax.f32 %v1918_v59, 0.0  ;;  %s2019_s12 = sld [smem:[#allocation7 + $0x1]] }
  0x84   : > { %v594_v15 = vmax.f32 %v1924_v62, 0.0  ;;  %v727_v16 = vrot.slane %v723_v63, 3  ;;  %v728_v17 = vrot.slane %v724_v2, 3  ;;  %v719_v18 = vadd.f32 %v715_v5, %v707_v4 }
  0x85   : > { %v739_v19 = vrot.slane %v735_v6, 4  ;;  %v740_v20 = vrot.slane %v736_v7, 4  ;;  %v770_v21 = vstv %s1911_s10  ;;  %v720_v22 = vadd.f32 %v716_v9, %v708_v8  ;;  %s2029_s10 = sld [smem:[#allocation3 + $0x180]] }
  0x86   : > { %v1947_v23 = vmul.f32 %v758_v13, %v1798_v43  ;;  %v1950_v24 = vmul.f32 %v758_v13, %v1800_v44  ;;  %v791_v25 = vstv %s1916_s13  ;;  %v751_v26 = vrot.slane %v1937_v11, 5  ;;  %s2033_s13 = sld [smem:[#allocation8 + $0x3]] }
  0x87   : > { %v752_v27 = vrot.slane %v1940_v12, 5  ;;  %v792_v28 = vmul.f32 %v791_v25, %v1754_v0  ;;  %v793_v29 = vmul.f32 %v791_v25, %v1756_v1  ;;  %v794_v30 = vstv %s1920_s14  ;;  %s2035_s14 = sld [smem:[#allocation3 + $0x181]] }
  0x88   : > { %v798_v31 = vstv %s1922_s15  ;;  %v810_v32 = vstv %s1929_s16  ;;  %v822_v33 = vstv %s1931_s18  ;;  %v1966_v34 = vmul.f32 %v770_v21, %v1798_v43  ;;  %s2041_s15 = sld [smem:[#allocation3 + $0x182]]  ;;  %s2043_s16 = sld [smem:[#allocation3 + $0x183]] }
  0x89   : > { %v1969_v35 = vmul.f32 %v770_v21, %v1800_v44  ;;  %v795_v36 = vadd.f32 %v794_v30, %v792_v28  ;;  %v796_v37 = vadd.f32 %v794_v30, %v793_v29  ;;  %v799_v38 = vmul.f32 %v798_v31, %v1754_v0  ;;  %s2063_s18 = sld [smem:[#allocation3 + $0x184]] }
  0x8a   : > { %v800_v39 = vmul.f32 %v798_v31, %v1756_v1  ;;  %v811_v40 = vmul.f32 %v810_v32, %v1754_v0  ;;  %v812_v41 = vmul.f32 %v810_v32, %v1756_v1  ;;  %v731_v42 = vadd.f32 %v727_v16, %v719_v18 }
  0x8b   : > { %v732_v45 = vadd.f32 %v728_v17, %v720_v22  ;;  %v823_v46 = vmul.f32 %v822_v33, %v1754_v0  ;;  %v824_v47 = vmul.f32 %v822_v33, %v1756_v1  ;;  %v803_v48 = vrot.slane %v799_v38, 1 }
  0x8c   : > { %v804_v49 = vrot.slane %v800_v39, 1  ;;  %v815_v50 = vrot.slane %v811_v40, 2  ;;  %v816_v51 = vrot.slane %v812_v41, 2  ;;  %v763_v52 = vrot.slane %v1947_v23, 6 }
  0x8d   : > { %v764_v53 = vrot.slane %v1950_v24, 6  ;;  %v827_v54 = vrot.slane %v823_v46, 3  ;;  %v828_v55 = vrot.slane %v824_v47, 3  ;;  %v807_v56 = vadd.f32 %v803_v48, %v795_v36 }
  0x8e   : > { %v808_v57 = vadd.f32 %v804_v49, %v796_v37  ;;  %v834_v58 = vstv %s1953_s19  ;;  %v846_v60 = vstv %s1955_s20  ;;  %v743_v61 = vadd.f32 %v739_v19, %v731_v42  ;;  %s2065_s19 = sld [smem:[#allocation3 + $0x185]]  ;;  %s2079_s20 = sld [smem:[#allocation3 + $0x186]] }
  0x8f   : > { %v744_v63 = vadd.f32 %v740_v20, %v732_v45  ;;  %v835_v2 = vmul.f32 %v834_v58, %v1754_v0  ;;  %v836_v3 = vmul.f32 %v834_v58, %v1756_v1  ;;  %v819_v4 = vadd.f32 %v815_v50, %v807_v56 }
  0x90   : > { %v820_v5 = vadd.f32 %v816_v51, %v808_v57  ;;  %v847_v6 = vmul.f32 %v846_v60, %v1754_v0  ;;  %v848_v7 = vmul.f32 %v846_v60, %v1756_v1  ;;  %v775_v8 = vrot.slane %v1966_v34, 7 }
  0x91   : > { %v776_v9 = vrot.slane %v1969_v35, 7  ;;  %v839_v11 = vrot.slane %v835_v2, 4  ;;  %v840_v12 = vrot.slane %v836_v3, 4  ;;  %v831_v13 = vadd.f32 %v827_v54, %v819_v4 }
  0x92   : > { %v832_v16 = vadd.f32 %v828_v55, %v820_v5  ;;  %v851_v17 = vrot.slane %v847_v6, 5  ;;  %v852_v18 = vrot.slane %v848_v7, 5  ;;  %v755_v19 = vadd.f32 %v751_v26, %v743_v61 }
  0x93   : > { %v756_v20 = vadd.f32 %v752_v27, %v744_v63  ;;  %v858_v21 = vstv %s1977_s9  ;;  %v870_v22 = vstv %s1979_s21  ;;  %v843_v25 = vadd.f32 %v839_v11, %v831_v13  ;;  %s2081_s9 = sld [smem:[#allocation3 + $0x187]]  ;;  %s2083_s21 = sld [smem:[#allocation5 + $0x180]] }
  0x94   : > { %v844_v28 = vadd.f32 %v840_v12, %v832_v16  ;;  %v859_v29 = vmul.f32 %v858_v21, %v1754_v0  ;;  %v860_v30 = vmul.f32 %v858_v21, %v1756_v1  ;;  %v871_v31 = vmul.f32 %v870_v22, %v1754_v0 }
  0x95   : > { %v872_v32 = vmul.f32 %v870_v22, %v1756_v1  ;;  %v882_v33 = vstv %s1981_s22  ;;  %v888_v36 = vstv %s1985_s26  ;;  %v855_v37 = vadd.f32 %v851_v17, %v843_v25  ;;  %s2085_s22 = sld [smem:[#allocation5 + $0x181]]  ;;  %s2091_s26 = sld [smem:[#allocation5 + $0x182]] }
  0x96   : > { %v856_v38 = vadd.f32 %v852_v18, %v844_v28  ;;  %v863_v26 = vrot.slane %v859_v29, 6  ;;  %v864_v27 = vrot.slane %v860_v30, 6  ;;  %v875_v39 = vrot.slane %v871_v31, 7 }
  0x97   : > { %v876_v40 = vrot.slane %v872_v32, 7  ;;  %v883_v41 = vmul.f32 %v882_v33, %v1798_v43  ;;  %v884_v42 = vmul.f32 %v882_v33, %v1800_v44  ;;  %v889_v47 = vmul.f32 %v888_v36, %v1798_v43 }
  0x98   : > { %v867_v45 = vadd.f32 %v863_v26, %v855_v37  ;;  %v868_v46 = vadd.f32 %v864_v27, %v856_v38  ;;  %v890_v48 = vmul.f32 %v888_v36, %v1800_v44  ;;  %v900_v49 = vstv %s1991_s23  ;;  %s2095_s23 = sld [smem:[#allocation5 + $0x183]] }
  0x99   : > { %v912_v50 = vstv %s1995_s24  ;;  %v924_v51 = vstv %s1997_s25  ;;  %v936_v54 = vstv %s2001_s4  ;;  %v893_v57 = vrot.slane %v889_v47, 1  ;;  %s2097_s24 = sld [smem:[#allocation5 + $0x184]]  ;;  %s2101_s25 = sld [smem:[#allocation5 + $0x185]] }
  0x9a   : > { %v879_v55 = vadd.f32 %v875_v39, %v867_v45  ;;  %v880_v56 = vadd.f32 %v876_v40, %v868_v46  ;;  %v894_v58 = vrot.slane %v890_v48, 1  ;;  %v901_v60 = vmul.f32 %v900_v49, %v1798_v43  ;;  %s2117_s4 = sld [smem:[#allocation5 + $0x186]] }
  0x9b   : > { %v902_v61 = vmul.f32 %v900_v49, %v1800_v44  ;;  %v913_v63 = vmul.f32 %v912_v50, %v1798_v43  ;;  %v914_v2 = vmul.f32 %v912_v50, %v1800_v44  ;;  %v925_v5 = vmul.f32 %v924_v51, %v1798_v43 }
  0x9c   : > { %v885_v3 = vadd.f32 %v883_v41, %v879_v55  ;;  %v886_v4 = vadd.f32 %v884_v42, %v880_v56  ;;  %v926_v6 = vmul.f32 %v924_v51, %v1800_v44  ;;  %v767_v7 = vadd.f32 %v763_v52, %v755_v19 }
  0x9d   : > { %v768_v11 = vadd.f32 %v764_v53, %v756_v20  ;;  %v905_v12 = vrot.slane %v901_v60, 2  ;;  %v906_v13 = vrot.slane %v902_v61, 2  ;;  %v917_v18 = vrot.slane %v913_v63, 3 }
  0x9e   : > { %v897_v16 = vadd.f32 %v893_v57, %v885_v3  ;;  %v898_v17 = vadd.f32 %v894_v58, %v886_v4  ;;  %v918_v21 = vrot.slane %v914_v2, 3  ;;  %v929_v22 = vrot.slane %v925_v5, 4 }
  0x9f   : > { %v937_v25 = vmul.f32 %v936_v54, %v1798_v43  ;;  %v938_v23 = vmul.f32 %v936_v54, %v1800_v44  ;;  %v948_v52 = vstv %s2013_s29  ;;  %v930_v19 = vrot.slane %v926_v6, 4  ;;  %s2119_s29 = sld [smem:[#allocation5 + $0x187]] }
  0xa0   : > { %v909_v24 = vadd.f32 %v905_v12, %v897_v16  ;;  %v910_v53 = vadd.f32 %v906_v13, %v898_v17  ;;  %v960_v20 = vstv %s2017_s30  ;;  %v2051_v28 = vadd.f32 %v775_v8, %v767_v7  ;;  %s2133_s30 = sld [smem:[#allocation7 + $0x2]] }
  0xa1   : > { %v2055_v29 = vadd.f32 %v776_v9, %v768_v11  ;;  %v784_v30 = vstv %s2019_s12  ;;  %v949_v31 = vmul.f32 %v948_v52, %v1798_v43  ;;  %v941_v36 = vrot.slane %v937_v25, 5 }
  0xa2   : > { %v921_v32 = vadd.f32 %v917_v18, %v909_v24  ;;  %v922_v33 = vadd.f32 %v918_v21, %v910_v53  ;;  %v950_v37 = vmul.f32 %v948_v52, %v1800_v44  ;;  %v942_v38 = vrot.slane %v938_v23, 5 }
  0xa3   : > { %v961_v34 = vmul.f32 %v960_v20, %v1798_v43  ;;  %v962_v8 = vmul.f32 %v960_v20, %v1800_v44  ;;  %v981_v35 = vstv %s2029_s10  ;;  %v984_v40 = vstv %s2033_s13  ;;  %s1169_s10 = sld [smem:[#allocation2]] }
  0xa4   : > { %v933_v9 = vadd.f32 %v929_v22, %v921_v32  ;;  %v934_v26 = vadd.f32 %v930_v19, %v922_v33  ;;  %v982_v27 = vmul.f32 %v981_v35, %v1754_v0  ;;  %v983_v39 = vmul.f32 %v981_v35, %v1756_v1 }
  0xa5   : > { %v988_v41 = vstv %s2035_s14  ;;  %v1000_v42 = vstv %s2041_s15  ;;  %v1012_v45 = vstv %s2043_s16  ;;  %v953_v46 = vrot.slane %v949_v31, 6  ;;  %s405_s14 = scalar_lea.vmem %s2184_s7, %s1746_s17 }
  0xa6   : > { %v954_v47 = vrot.slane %v950_v37, 6  ;;  %v985_v48 = vadd.f32 %v984_v40, %v982_v27  ;;  %v986_v49 = vadd.f32 %v984_v40, %v983_v39  ;;  %v989_v50 = vmul.f32 %v988_v41, %v1754_v0 }
  0xa7   : > { %v990_v51 = vmul.f32 %v988_v41, %v1756_v1  ;;  %v1001_v54 = vmul.f32 %v1000_v42, %v1754_v0  ;;  %v1002_v55 = vmul.f32 %v1000_v42, %v1756_v1  ;;  %v945_v56 = vadd.f32 %v941_v36, %v933_v9 }
  0xa8   : > { %v946_v57 = vadd.f32 %v942_v38, %v934_v26  ;;  %v1013_v58 = vmul.f32 %v1012_v45, %v1754_v0  ;;  %v1014_v60 = vmul.f32 %v1012_v45, %v1756_v1  ;;  %v993_v61 = vrot.slane %v989_v50, 1 }
  0xa9   : > { %v994_v63 = vrot.slane %v990_v51, 1  ;;  %v1005_v2 = vrot.slane %v1001_v54, 2  ;;  %v1006_v3 = vrot.slane %v1002_v55, 2  ;;  %v965_v4 = vrot.slane %v961_v34, 7 }
  0xaa   : > { %v966_v5 = vrot.slane %v962_v8, 7  ;;  %v1017_v6 = vrot.slane %v1013_v58, 3  ;;  %v1018_v7 = vrot.slane %v1014_v60, 3  ;;  %v997_v11 = vadd.f32 %v993_v61, %v985_v48 }
  0xab   : > { %v998_v12 = vadd.f32 %v994_v63, %v986_v49  ;;  %v1024_v13 = vstv %s2063_s18  ;;  %v1036_v16 = vstv %s2065_s19  ;;  %v957_v17 = vadd.f32 %v953_v46, %v945_v56 }
  0xac   : > { %v958_v18 = vadd.f32 %v954_v47, %v946_v57  ;;  %v1025_v21 = vmul.f32 %v1024_v13, %v1754_v0  ;;  %v1026_v22 = vmul.f32 %v1024_v13, %v1756_v1  ;;  %v1009_v25 = vadd.f32 %v1005_v2, %v997_v11 }
  0xad   : > { %v1010_v23 = vadd.f32 %v1006_v3, %v998_v12  ;;  %v1037_v52 = vmul.f32 %v1036_v16, %v1754_v0  ;;  %v1038_v24 = vmul.f32 %v1036_v16, %v1756_v1  ;;  %v781_v53 = vmax.f32 %v2051_v28, 0.0 }
  0xae   : > { %v782_v19 = vmax.f32 %v2055_v29, 0.0  ;;  %v1029_v20 = vrot.slane %v1025_v21, 4  ;;  %v1030_v31 = vrot.slane %v1026_v22, 4  ;;  %v1021_v32 = vadd.f32 %v1017_v6, %v1009_v25 }
  0xaf   : > { %v1022_v33 = vadd.f32 %v1018_v7, %v1010_v23  ;;  %v1041_v36 = vrot.slane %v1037_v52, 5  ;;  %v1042_v37 = vrot.slane %v1038_v24, 5  ;;  %v2103_v38 = vadd.f32 %v965_v4, %v957_v17 }
  0xb0   : > { %v2105_v34 = vadd.f32 %v966_v5, %v958_v18  ;;  %v1048_v8 = vstv %s2079_s20  ;;  %v1060_v35 = vstv %s2081_s9  ;;  %v1033_v9 = vadd.f32 %v1029_v20, %v1021_v32 }
  0xb1   : > { %v1034_v26 = vadd.f32 %v1030_v31, %v1022_v33  ;;  %v1049_v27 = vmul.f32 %v1048_v8, %v1754_v0  ;;  %v1050_v39 = vmul.f32 %v1048_v8, %v1756_v1  ;;  %v1061_v40 = vmul.f32 %v1060_v35, %v1754_v0 }
  0xb2   : > { %v1062_v41 = vmul.f32 %v1060_v35, %v1756_v1  ;;  %v1072_v42 = vstv %s2083_s21  ;;  %v1078_v45 = vstv %s2085_s22  ;;  %v1045_v46 = vadd.f32 %v1041_v36, %v1033_v9 }
  0xb3   : > { %v1046_v47 = vadd.f32 %v1042_v37, %v1034_v26  ;;  %v1053_v48 = vrot.slane %v1049_v27, 6  ;;  %v1054_v49 = vrot.slane %v1050_v39, 6  ;;  %v1065_v50 = vrot.slane %v1061_v40, 7 }
  0xb4   : > { %v1066_v51 = vrot.slane %v1062_v41, 7  ;;  %v1073_v54 = vmul.f32 %v1072_v42, %v1798_v43  ;;  %v1074_v55 = vmul.f32 %v1072_v42, %v1800_v44  ;;  %v1079_v56 = vmul.f32 %v1078_v45, %v1798_v43 }
  0xb5   : > { %v1057_v0 = vadd.f32 %v1053_v48, %v1045_v46  ;;  %v1058_v1 = vadd.f32 %v1054_v49, %v1046_v47  ;;  %v1080_v57 = vmul.f32 %v1078_v45, %v1800_v44  ;;  %v1090_v58 = vstv %s2091_s26 }
  0xb6   : > { %v1102_v60 = vstv %s2095_s23  ;;  %v1114_v61 = vstv %s2097_s24  ;;  %v1126_v63 = vstv %s2101_s25  ;;  %v1083_v4 = vrot.slane %v1079_v56, 1 }
  0xb7   : > { %v1069_v2 = vadd.f32 %v1065_v50, %v1057_v0  ;;  %v1070_v3 = vadd.f32 %v1066_v51, %v1058_v1  ;;  %v1084_v5 = vrot.slane %v1080_v57, 1  ;;  %v1091_v6 = vmul.f32 %v1090_v58, %v1798_v43 }
  0xb8   : > { %v1092_v7 = vmul.f32 %v1090_v58, %v1800_v44  ;;  %v1103_v11 = vmul.f32 %v1102_v60, %v1798_v43  ;;  %v1104_v12 = vmul.f32 %v1102_v60, %v1800_v44  ;;  %v1115_v17 = vmul.f32 %v1114_v61, %v1798_v43 }
  0xb9   : > { %v1075_v13 = vadd.f32 %v1073_v54, %v1069_v2  ;;  %v1076_v16 = vadd.f32 %v1074_v55, %v1070_v3  ;;  %v1116_v18 = vmul.f32 %v1114_v61, %v1800_v44  ;;  %v1095_v21 = vrot.slane %v1091_v6, 2 }
  0xba   : > { %v1096_v22 = vrot.slane %v1092_v7, 2  ;;  %v1107_v25 = vrot.slane %v1103_v11, 3  ;;  %v1108_v23 = vrot.slane %v1104_v12, 3  ;;  %v1119_v20 = vrot.slane %v1115_v17, 4 }
  0xbb   : > { %v1087_v52 = vadd.f32 %v1083_v4, %v1075_v13  ;;  %v1088_v24 = vadd.f32 %v1084_v5, %v1076_v16  ;;  %v1120_v31 = vrot.slane %v1116_v18, 4  ;;  %v1127_v32 = vmul.f32 %v1126_v63, %v1798_v43 }
  0xbc   : > { %v1128_v33 = vmul.f32 %v1126_v63, %v1800_v44  ;;  %v1138_v36 = vstv %s2117_s4  ;;  %v1150_v37 = vstv %s2119_s29  ;;  %v597_v27 = vmul.f32 %v596_v10, %v593_v14 }
  0xbd   : > { %v1099_v8 = vadd.f32 %v1095_v21, %v1087_v52  ;;  %v1100_v35 = vadd.f32 %v1096_v22, %v1088_v24  ;;  %v1139_v9 = vmul.f32 %v1138_v36, %v1798_v43  ;;  %v1140_v26 = vmul.f32 %v1138_v36, %v1800_v44 }
  0xbe   : > { %v598_v39 = vmul.f32 %v596_v10, %v594_v15  ;;  %v1131_v40 = vrot.slane %v1127_v32, 5  ;;  %v1132_v41 = vrot.slane %v1128_v33, 5  ;;  %v1151_v46 = vmul.f32 %v1150_v37, %v1798_v43 }
  0xbf   : > { %v1111_v42 = vadd.f32 %v1107_v25, %v1099_v8  ;;  %v1112_v45 = vadd.f32 %v1108_v23, %v1100_v35  ;;  %v1152_v47 = vmul.f32 %v1150_v37, %v1800_v44  ;;  %v785_v48 = vmul.f32 %v784_v30, %v781_v53 }
  0xc0   : > { %v786_v59 = vmul.f32 %v784_v30, %v782_v19  ;;  %v971_v62 = vmax.f32 %v2103_v38, 0.0  ;;  %v972_v10 = vmax.f32 %v2105_v34, 0.0  ;;  %v1143_v49 = vrot.slane %v1139_v9, 6 }
  0xc1   : > { %v1123_v14 = vadd.f32 %v1119_v20, %v1111_v42  ;;  %v1124_v15 = vadd.f32 %v1120_v31, %v1112_v45  ;;  %v1144_v50 = vrot.slane %v1140_v26, 6  ;;  %v974_v51 = vstv %s2133_s30 }
  0xc2   : > { %v1155_v0 = vrot.slane %v1151_v46, 7  ;;  %v1156_v28 = vrot.slane %v1152_v47, 7  ;;  %v787_v1 = vadd.f32 %v785_v48, %v597_v27  ;;  %v788_v53 = vadd.f32 %v786_v59, %v598_v39 }
  0xc3   : > { %v1135_v54 = vadd.f32 %v1131_v40, %v1123_v14  ;;  %v1136_v55 = vadd.f32 %v1132_v41, %v1124_v15  ;;  %v975_v29 = vmul.f32 %v974_v51, %v971_v62  ;;  %v976_v56 = vmul.f32 %v974_v51, %v972_v10 }
  0xc4   : > { %v1164_v34 = vstv %s1429_s8  ;;  %v1170_v4 = vstv %s1169_s10  ;;  %v1185_v22 = vlaneseq }
  0xc5   : > { %v1147_v30 = vadd.f32 %v1143_v49, %v1135_v54  ;;  %v1148_v19 = vadd.f32 %v1144_v50, %v1136_v55  ;;  %v977_v58 = vadd.f32 %v975_v29, %v787_v1  ;;  %v978_v60 = vadd.f32 %v976_v56, %v788_v53 }
  0xc6   : > { %v1186_v25 = vshrl.u32 %v1185_v22, 7 }
  0xc7   : > { %v1159_v38 = vadd.f32 %v1155_v0, %v1147_v30  ;;  %v1160_v57 = vadd.f32 %v1156_v28, %v1148_v19 }
  0xc8   : > { %v1187_v23 = vsub.s32 0, %v1186_v25 }
  0xc9   : > { %v1161_v61 = vmax.f32 %v1159_v38, 0.0  ;;  %v1162_v63 = vmax.f32 %v1160_v57, 0.0 }
  0xcb   : > { %v1165_v2 = vmul.f32 %v1164_v34, %v1161_v61  ;;  %v1166_v3 = vmul.f32 %v1164_v34, %v1162_v63 }
  0xcd   : > { %v1167_v5 = vadd.f32 %v1165_v2, %v977_v58  ;;  %v1168_v6 = vadd.f32 %v1166_v3, %v978_v60 }
  0xcf   : > { %v1171_v7 = vadd.f32 %v1170_v4, %v1167_v5  ;;  %v1172_v11 = vadd.f32 %v1170_v4, %v1168_v6 }
  0xd1   : > { %v1430_v12 = vmul.f32 -1.442695, %v1171_v7  ;;  %v1431_v13 = vmul.f32 -1.442695, %v1172_v11 }
  0xd3   : > { %1502 = vpow2.f32 %v1430_v12 }
  0xd4   : > { %1504 = vpow2.f32 %v1431_v13 }
  0xdd   : > { %v1503_v16 = vpop.eup %1502 }
  0xde   : > { %v1505_v17 = vpop.eup %1504  ;;  %v1179_v18 = vadd.f32 1.0, %v1503_v16 }
  0xdf   : > { %v1180_v21 = vadd.f32 1.0, %v1505_v17 }
  0xe0   : > { %1506 = vrcp.f32 %v1179_v18 }
  0xe1   : > { %1508 = vrcp.f32 %v1180_v21 }
  0xea   : > { %v1507_v52 = vpop.eup %1506 }
  0xeb   : > { %v1509_v24 = vpop.eup %1508  ;;  %v1188_v20 = vrot.slane %v1507_v52, %v1187_v23 }
  0xec   : > { %v1192_v31 = vrot.slane %v1509_v24, %v1187_v23 }
  0xed   : > { %v1193_v32 = vmul.f32 %v1188_v20, %v1798_v43 }
  0xee   : > { %v1194_v33 = vmul.f32 %v1192_v31, %v1800_v44 }
  0xef   : > { %1195 = vst [vmem:[%s405_s14] sm:$0xff] %v1193_v32 }
  0xf0   : > { %1196 = vst [vmem:[%s405_s14 + $0x8] sm:$0xff] %v1194_v33 }
  0xf1 PF: > { %s21_s28 = sadd.s32 1, %s1604_s28   ;;  %s2194_s26 = smov %s1600_s27 }
  0xf2   : > { %p18_p8 = scmp.ge.s32.totalorder %s21_s28, 4   ;;  %s2195_s27 = smov %s2197_s11 }
  0xf4   :  { %20 = sbr.rel (!%p18_p8) target bundleno = 6 (0x6), region = 98 }
  0xfb   :  { %1227 = vsyncpa [#allocation4], 1 }
  0xfc   :  { %1229 = vsyncpa [#allocation4 + $0x1], 1 }
  0xfd   :  { %1230 = vsyncpa [#allocation6], 1 }
  0xfe   :  { %1231 = vsyncpa [#allocation9], 1 }

</bundles_post_ra>
